<compile_context>
chip_gen: v7x
topology: tpu7x:2x2x1
jax: 0.10.0
libtpu: 0.0.40
codegen_flags: <defaults>
</compile_context>

<pallas_src>
import functools

import jax
import jax.numpy as jnp
import numpy as np
from jax import lax
from jax.experimental import pallas as pl
from jax.experimental.pallas import tpu as pltpu

BATCH_SIZE = 4  # hardcoded in the PyTorch module


# ----------------------------- Pallas kernel --------------------------------
def _bilstm_fused_kernel(x_ref, wx_ref, b_ref, wh3_ref, hc_ref, *, T, BP, H):
    """Fused bidirectional LSTM recurrence (single invocation, all refs in VMEM).

    x_ref  : (T*BP, 2D)  rows are [x[t] | x[T-1-t]] (batch padded to BP=8)
    wx_ref : (2D, 8H)    fused gate-major input-projection weights
                         rows 0:D -> forward slots, rows D:2D -> reverse slots
    b_ref  : (1, 8H)     fused biases matching wx_ref's column layout
    wh3_ref: (6H, 8H)    bf16 [W_hi ; W_hi ; W_lo] for the single-pass bf16x3
                         recurrent dot (block-diagonal fwd/rev, gate-major)
    hc_ref : (BP, 4H)    output slab [h_f | h_r | c_f | c_r]
    """
    H2, H4 = 2 * H, 4 * H

    # ---- One-shot input projection: all T steps, both directions, biases ----
    # Off the recurrent critical path; HIGHEST here keeps the pre-activations
    # at full f32 accuracy for ~no latency cost.
    xp = jnp.dot(x_ref[...], wx_ref[...],
                 precision=lax.Precision.HIGHEST,
                 preferred_element_type=jnp.float32) + b_ref[...]   # (T*BP, 8H)

    wh3 = wh3_ref[...]                                              # (6H, 8H) bf16

    h = jnp.zeros((BP, H2), jnp.float32)   # [h_fwd | h_rev]
    c = jnp.zeros((BP, H2), jnp.float32)   # [c_fwd | c_rev]

    # ---- Fully unrolled recurrence (T is a small static constant) ------------
    for t in range(T):
        # Sublane-tile-aligned slice (rows start at multiples of BP=8).
        pre = xp[t * BP:(t + 1) * BP, :]                            # (BP, 8H)

        # bf16x3 recurrent dot in ONE MXU pass:
        #   h_hi @ W_hi + h_lo @ W_hi + h_hi @ W_lo, accumulated in f32.
        h_hi = h.astype(jnp.bfloat16).astype(jnp.float32)
        h_lo = h - h_hi
        lhs3 = jnp.concatenate([h, h_lo, h], axis=1).astype(jnp.bfloat16)  # (BP, 6H)
        gates = pre + jnp.dot(lhs3, wh3,
                              preferred_element_type=jnp.float32)   # (BP, 8H)

        blk_if = gates[:, :H4]   # [ i_f i_r | f_f f_r ]  (one 128-lane block for H=32)
        blk_go = gates[:, H4:]   # [ g_f g_r | o_f o_r ]

        i_g = jax.nn.sigmoid(blk_if[:, :H2])
        f_g = jax.nn.sigmoid(pltpu.roll(blk_if, H2, 1)[:, :H2])
        g_g = jnp.tanh(blk_go[:, :H2])
        o_g = jax.nn.sigmoid(pltpu.roll(blk_go, H2, 1)[:, :H2])

        c = f_g * c + i_g * g_g
        h = o_g * jnp.tanh(c)

    # Single lane-aligned (BP, 4H) = (8, 128) store.
    hc_ref[...] = jnp.concatenate([h, c], axis=1)


# ------------------------------ Param packing --------------------------------
def _pack_fused_params(params, H):
    """Re-lay the per-direction LSTM weights out for the fused kernel (ONCE).

    Fused gate axis (8H wide): [i_f i_r | f_f f_r | g_f g_r | o_f o_r].
      wx  (2D, 8H):  rows 0:D multiply x[t]      -> forward slots,
                     rows D:2D multiply x[T-1-t] -> reverse slots.
      b   (1, 8H):   biases in the same column layout.
      wh3 (6H, 8H):  bf16 [W_hi ; W_hi ; W_lo] where W (2H, 8H) is the
                     block-diagonal recurrent weight (rows 0:H -> fwd slots,
                     rows H:2H -> rev slots) split into bf16 hi/lo parts.
    """
    def interleave(fwd, rev):
        lead = fwd.shape[:-1]
        f4 = fwd.reshape(lead + (4, H))
        r4 = rev.reshape(lead + (4, H))
        return jnp.stack([f4, r4], axis=-2).reshape(lead + (8 * H,))

    z_ih = jnp.zeros_like(params["wih_f"])
    z_hh = jnp.zeros_like(params["whh_f"])

    wx = jnp.concatenate([interleave(params["wih_f"], z_ih),
                          interleave(z_ih, params["wih_r"])], axis=0)   # (2D, 8H)
    b = interleave(params["b_f"], params["b_r"])                        # (1, 8H)

    whh = jnp.concatenate([interleave(params["whh_f"], z_hh),
                           interleave(z_hh, params["whh_r"])], axis=0)  # (2H, 8H)
    whh_hi = whh.astype(jnp.bfloat16)
    whh_lo = (whh - whh_hi.astype(jnp.float32)).astype(jnp.bfloat16)
    wh3 = jnp.concatenate([whh_hi, whh_hi, whh_lo], axis=0)             # (6H, 8H) bf16
    return wx, b, wh3


# -------------------------------- Wrapper -------------------------------------
def _encode(x, wx, b, wh3):
    """x: (T, B, D) float32. Returns (h_n, c_n), each (2, B, H)."""
    T, B, D = x.shape
    H = wx.shape[1] // 8
    BP = ((B + 7) // 8) * 8      # pad batch to the 8-row sublane tile

    # Rows are [x[t] | x[T-1-t]]: the single projection matmul then yields the
    # gate pre-activations for both directions with no zero-padded columns.
    x_pair = jnp.concatenate([x, x[::-1]], axis=-1)                 # (T, B, 2D)
    x_pair = jnp.pad(x_pair, ((0, 0), (0, BP - B), (0, 0)))         # (T, BP, 2D)
    x_flat = x_pair.reshape(T * BP, 2 * D)

    kernel = functools.partial(_bilstm_fused_kernel, T=T, BP=BP, H=H)
    vmem = lambda: pl.BlockSpec(memory_space=pltpu.MemorySpace.VMEM)

    hc = pl.pallas_call(
        kernel,
        out_shape=jax.ShapeDtypeStruct((BP, 4 * H), jnp.float32),
        in_specs=[vmem() for _ in range(4)],
        out_specs=vmem(),
    )(x_flat, wx, b, wh3)

    h = hc[:B, :2 * H]
    c = hc[:B, 2 * H:]
    h_n = jnp.stack([h[:, :H], h[:, H:]], axis=0)   # (2, B, H)
    c_n = jnp.stack([c[:, :H], c[:, H:]], axis=0)
    return h_n, c_n


def make_sentence_encoder(params):
    """Pack params ONCE and return a jitted single-argument encoder (review R1)."""
    H = params["whh_f"].shape[0]
    wx, b, wh3 = _pack_fused_params(params, H)

    @jax.jit
    def encoder(x):
        return _encode(x, wx, b, wh3)

    return encoder


# ------------------------- Deterministic params -------------------------------
def init_params(key, in_dim, out_dim):
    """Mimics nn.LSTM(in_dim, out_dim, bidirectional=True) parameter shapes.

    PyTorch stores weight_ih_l0 (4H, D), weight_hh_l0 (4H, H), two biases (4H,),
    plus the `_reverse` copies. We pre-transpose the weights and fuse the two
    biases (b_ih + b_hh); gate order along the 4H axis is PyTorch's [i, f, g, o].
    """
    H4 = 4 * out_dim
    ks = jax.random.split(key, 8)
    scale = 1.0 / np.sqrt(out_dim)

    def u(k, shape):
        return jax.random.uniform(k, shape, jnp.float32, -scale, scale)

    w_ih_f = u(ks[0], (H4, in_dim))
    w_hh_f = u(ks[1], (H4, out_dim))
    b_ih_f = u(ks[2], (H4,))
    b_hh_f = u(ks[3], (H4,))
    w_ih_r = u(ks[4], (H4, in_dim))
    w_hh_r = u(ks[5], (H4, out_dim))
    b_ih_r = u(ks[6], (H4,))
    b_hh_r = u(ks[7], (H4,))

    return {
        "wih_f": w_ih_f.T,                           # (D, 4H)
        "whh_f": w_hh_f.T,                           # (H, 4H)
        "b_f": (b_ih_f + b_hh_f).reshape(1, H4),     # (1, 4H)
        "wih_r": w_ih_r.T,
        "whh_r": w_hh_r.T,
        "b_r": (b_ih_r + b_hh_r).reshape(1, H4),
    }


# --------------------------- Pure-JAX reference -------------------------------
def reference_forward(x, params):
    T, B, _ = x.shape
    H = params["whh_f"].shape[0]
    hi = lax.Precision.HIGHEST

    def cell(x_t, h, c, wih, whh, b):
        gates = (jnp.dot(x_t, wih, precision=hi)
                 + jnp.dot(h, whh, precision=hi) + b)
        i = jax.nn.sigmoid(gates[:, 0 * H:1 * H])
        f = jax.nn.sigmoid(gates[:, 1 * H:2 * H])
        g = jnp.tanh(gates[:, 2 * H:3 * H])
        o = jax.nn.sigmoid(gates[:, 3 * H:4 * H])
        c_new = f * c + i * g
        return o * jnp.tanh(c_new), c_new

    h_f = c_f = h_r = c_r = jnp.zeros((B, H), jnp.float32)
    for t in range(T):
        h_f, c_f = cell(x[t], h_f, c_f, params["wih_f"], params["whh_f"], params["b_f"])
        h_r, c_r = cell(x[T - 1 - t], h_r, c_r, params["wih_r"], params["whh_r"], params["b_r"])
    return jnp.stack([h_f, h_r]), jnp.stack([c_f, c_r])


# ---------------------------------- Main --------------------------------------
if __name__ == "__main__":
    seq_len = 8
    batch = BATCH_SIZE      # must be 4: hardcoded in the PyTorch module
    in_dim = 16
    out_dim = 32

    key = jax.random.PRNGKey(0)
    k_x, k_p = jax.random.split(key)
    x = jax.random.normal(k_x, (seq_len, batch, in_dim), jnp.float32)
    params = init_params(k_p, in_dim, out_dim)

    encoder = make_sentence_encoder(params)   # pack once + jit (no per-call repacking)
    h_n, c_n = encoder(x)
    h_n = jax.block_until_ready(h_n)
    c_n = jax.block_until_ready(c_n)

    h_ref, c_ref = reference_forward(x, params)

    assert h_n.shape == (2, batch, out_dim)
    assert c_n.shape == (2, batch, out_dim)
    # bf16x3 recurrent dot keeps ~f32 accuracy; comfortably inside 1e-4.
    np.testing.assert_allclose(np.asarray(h_n), np.asarray(h_ref), atol=1e-4, rtol=1e-4)
    np.testing.assert_allclose(np.asarray(c_n), np.asarray(c_ref), atol=1e-4, rtol=1e-4)

    print("KERNEL_OK")
</pallas_src>

<mosaic_0001>
module attributes {stable_mosaic.version = 11 : i64} {
  func.func @_bilstm_fused_kernel(%arg0: memref<64x32xf32, #tpu.memory_space<vmem>>, %arg1: memref<32x256xf32, #tpu.memory_space<vmem>>, %arg2: memref<1x256xf32, #tpu.memory_space<vmem>>, %arg3: memref<192x256xbf16, #tpu.memory_space<vmem>>, %arg4: memref<8x128xf32, #tpu.memory_space<vmem>>) attributes {dimension_semantics = [], scalar_prefetch = 0 : i64, scratch_operands = 0 : i64, tpu.core_type = #tpu.core_type<tc>} {
    %c0 = arith.constant 0 : index
    %c0_0 = arith.constant 0 : index
    %0 = vector.load %arg0[%c0, %c0_0] : memref<64x32xf32, #tpu.memory_space<vmem>>, vector<64x32xf32>
    %c0_1 = arith.constant 0 : index
    %c0_2 = arith.constant 0 : index
    %1 = vector.load %arg1[%c0_1, %c0_2] : memref<32x256xf32, #tpu.memory_space<vmem>>, vector<32x256xf32>
    %cst = arith.constant dense<0.000000e+00> : vector<64x256xf32>
    %2 = tpu.matmul %0, %1, %cst {dimension_numbers = #tpu.dot_dimension_numbers<[1], [0], [0], [1], [0, 0, 1, 1], [], []>, precision = #tpu.contract_precision<fp32>} : vector<64x32xf32>, vector<32x256xf32>, vector<64x256xf32> -> vector<64x256xf32>
    %c0_3 = arith.constant 0 : index
    %c0_4 = arith.constant 0 : index
    %3 = vector.load %arg2[%c0_3, %c0_4] : memref<1x256xf32, #tpu.memory_space<vmem>>, vector<1x256xf32>
    %4 = vector.broadcast %3 : vector<1x256xf32> to vector<64x256xf32>
    %5 = arith.addf %2, %4 : vector<64x256xf32>
    %c0_5 = arith.constant 0 : index
    %c0_6 = arith.constant 0 : index
    %6 = vector.load %arg3[%c0_5, %c0_6] : memref<192x256xbf16, #tpu.memory_space<vmem>>, vector<192x256xbf16>
    %cst_7 = arith.constant 0.000000e+00 : f32
    %7 = vector.broadcast %cst_7 : f32 to vector<8x64xf32>
    %cst_8 = arith.constant 0.000000e+00 : f32
    %8 = vector.broadcast %cst_8 : f32 to vector<8x64xf32>
    %9 = vector.extract_strided_slice %5 {offsets = [0, 0], sizes = [8, 256], strides = [1, 1]} : vector<64x256xf32> to vector<8x256xf32>
    %10 = arith.truncf %7 : vector<8x64xf32> to vector<8x64xbf16>
    %11 = arith.extf %10 : vector<8x64xbf16> to vector<8x64xf32>
    %12 = arith.subf %7, %11 : vector<8x64xf32>
    %13 = tpu.concatenate %7, %12, %7 in 1 : vector<8x64xf32>, vector<8x64xf32>, vector<8x64xf32> -> vector<8x192xf32>
    %14 = arith.truncf %13 : vector<8x192xf32> to vector<8x192xbf16>
    %cst_9 = arith.constant dense<0.000000e+00> : vector<8x256xf32>
    %15 = tpu.matmul %14, %6, %cst_9 {dimension_numbers = #tpu.dot_dimension_numbers<[1], [0], [0], [1], [0, 0, 1, 1], [], []>} : vector<8x192xbf16>, vector<192x256xbf16>, vector<8x256xf32> -> vector<8x256xf32>
    %16 = arith.addf %9, %15 : vector<8x256xf32>
    %17 = vector.extract_strided_slice %16 {offsets = [0, 0], sizes = [8, 128], strides = [1, 1]} : vector<8x256xf32> to vector<8x128xf32>
    %18 = vector.extract_strided_slice %16 {offsets = [0, 128], sizes = [8, 128], strides = [1, 1]} : vector<8x256xf32> to vector<8x128xf32>
    %19 = vector.extract_strided_slice %17 {offsets = [0, 0], sizes = [8, 64], strides = [1, 1]} : vector<8x128xf32> to vector<8x64xf32>
    %20 = arith.negf %19 : vector<8x64xf32>
    %21 = math.exp %20 : vector<8x64xf32>
    %cst_10 = arith.constant 1.000000e+00 : f32
    %22 = vector.broadcast %cst_10 : f32 to vector<8x64xf32>
    %23 = arith.addf %22, %21 : vector<8x64xf32>
    %24 = arith.divf %22, %23 : vector<8x64xf32>
    %c64_i32 = arith.constant 64 : i32
    %25 = tpu.dynamic_rotate %17 by %c64_i32 dim 1 : vector<8x128xf32>, i32 -> vector<8x128xf32>
    %26 = vector.extract_strided_slice %25 {offsets = [0, 0], sizes = [8, 64], strides = [1, 1]} : vector<8x128xf32> to vector<8x64xf32>
    %27 = arith.negf %26 : vector<8x64xf32>
    %28 = math.exp %27 : vector<8x64xf32>
    %cst_11 = arith.constant 1.000000e+00 : f32
    %29 = vector.broadcast %cst_11 : f32 to vector<8x64xf32>
    %30 = arith.addf %29, %28 : vector<8x64xf32>
    %31 = arith.divf %29, %30 : vector<8x64xf32>
    %32 = vector.extract_strided_slice %18 {offsets = [0, 0], sizes = [8, 64], strides = [1, 1]} : vector<8x128xf32> to vector<8x64xf32>
    %33 = math.tanh %32 : vector<8x64xf32>
    %c64_i32_12 = arith.constant 64 : i32
    %34 = tpu.dynamic_rotate %18 by %c64_i32_12 dim 1 : vector<8x128xf32>, i32 -> vector<8x128xf32>
    %35 = vector.extract_strided_slice %34 {offsets = [0, 0], sizes = [8, 64], strides = [1, 1]} : vector<8x128xf32> to vector<8x64xf32>
    %36 = arith.negf %35 : vector<8x64xf32>
    %37 = math.exp %36 : vector<8x64xf32>
    %cst_13 = arith.constant 1.000000e+00 : f32
    %38 = vector.broadcast %cst_13 : f32 to vector<8x64xf32>
    %39 = arith.addf %38, %37 : vector<8x64xf32>
    %40 = arith.divf %38, %39 : vector<8x64xf32>
    %41 = arith.mulf %31, %8 : vector<8x64xf32>
    %42 = arith.mulf %24, %33 : vector<8x64xf32>
    %43 = arith.addf %41, %42 : vector<8x64xf32>
    %44 = math.tanh %43 : vector<8x64xf32>
    %45 = arith.mulf %40, %44 : vector<8x64xf32>
    %46 = vector.extract_strided_slice %5 {offsets = [8, 0], sizes = [8, 256], strides = [1, 1]} : vector<64x256xf32> to vector<8x256xf32>
    %47 = arith.truncf %45 : vector<8x64xf32> to vector<8x64xbf16>
    %48 = arith.extf %47 : vector<8x64xbf16> to vector<8x64xf32>
    %49 = arith.subf %45, %48 : vector<8x64xf32>
    %50 = tpu.concatenate %45, %49, %45 in 1 : vector<8x64xf32>, vector<8x64xf32>, vector<8x64xf32> -> vector<8x192xf32>
    %51 = arith.truncf %50 : vector<8x192xf32> to vector<8x192xbf16>
    %cst_14 = arith.constant dense<0.000000e+00> : vector<8x256xf32>
    %52 = tpu.matmul %51, %6, %cst_14 {dimension_numbers = #tpu.dot_dimension_numbers<[1], [0], [0], [1], [0, 0, 1, 1], [], []>} : vector<8x192xbf16>, vector<192x256xbf16>, vector<8x256xf32> -> vector<8x256xf32>
    %53 = arith.addf %46, %52 : vector<8x256xf32>
    %54 = vector.extract_strided_slice %53 {offsets = [0, 0], sizes = [8, 128], strides = [1, 1]} : vector<8x256xf32> to vector<8x128xf32>
    %55 = vector.extract_strided_slice %53 {offsets = [0, 128], sizes = [8, 128], strides = [1, 1]} : vector<8x256xf32> to vector<8x128xf32>
    %56 = vector.extract_strided_slice %54 {offsets = [0, 0], sizes = [8, 64], strides = [1, 1]} : vector<8x128xf32> to vector<8x64xf32>
    %57 = arith.negf %56 : vector<8x64xf32>
    %58 = math.exp %57 : vector<8x64xf32>
    %cst_15 = arith.constant 1.000000e+00 : f32
    %59 = vector.broadcast %cst_15 : f32 to vector<8x64xf32>
    %60 = arith.addf %59, %58 : vector<8x64xf32>
    %61 = arith.divf %59, %60 : vector<8x64xf32>
    %c64_i32_16 = arith.constant 64 : i32
    %62 = tpu.dynamic_rotate %54 by %c64_i32_16 dim 1 : vector<8x128xf32>, i32 -> vector<8x128xf32>
    %63 = vector.extract_strided_slice %62 {offsets = [0, 0], sizes = [8, 64], strides = [1, 1]} : vector<8x128xf32> to vector<8x64xf32>
    %64 = arith.negf %63 : vector<8x64xf32>
    %65 = math.exp %64 : vector<8x64xf32>
    %cst_17 = arith.constant 1.000000e+00 : f32
    %66 = vector.broadcast %cst_17 : f32 to vector<8x64xf32>
    %67 = arith.addf %66, %65 : vector<8x64xf32>
    %68 = arith.divf %66, %67 : vector<8x64xf32>
    %69 = vector.extract_strided_slice %55 {offsets = [0, 0], sizes = [8, 64], strides = [1, 1]} : vector<8x128xf32> to vector<8x64xf32>
    %70 = math.tanh %69 : vector<8x64xf32>
    %c64_i32_18 = arith.constant 64 : i32
    %71 = tpu.dynamic_rotate %55 by %c64_i32_18 dim 1 : vector<8x128xf32>, i32 -> vector<8x128xf32>
    %72 = vector.extract_strided_slice %71 {offsets = [0, 0], sizes = [8, 64], strides = [1, 1]} : vector<8x128xf32> to vector<8x64xf32>
    %73 = arith.negf %72 : vector<8x64xf32>
    %74 = math.exp %73 : vector<8x64xf32>
    %cst_19 = arith.constant 1.000000e+00 : f32
    %75 = vector.broadcast %cst_19 : f32 to vector<8x64xf32>
    %76 = arith.addf %75, %74 : vector<8x64xf32>
    %77 = arith.divf %75, %76 : vector<8x64xf32>
    %78 = arith.mulf %68, %43 : vector<8x64xf32>
    %79 = arith.mulf %61, %70 : vector<8x64xf32>
    %80 = arith.addf %78, %79 : vector<8x64xf32>
    %81 = math.tanh %80 : vector<8x64xf32>
    %82 = arith.mulf %77, %81 : vector<8x64xf32>
    %83 = vector.extract_strided_slice %5 {offsets = [16, 0], sizes = [8, 256], strides = [1, 1]} : vector<64x256xf32> to vector<8x256xf32>
    %84 = arith.truncf %82 : vector<8x64xf32> to vector<8x64xbf16>
    %85 = arith.extf %84 : vector<8x64xbf16> to vector<8x64xf32>
    %86 = arith.subf %82, %85 : vector<8x64xf32>
    %87 = tpu.concatenate %82, %86, %82 in 1 : vector<8x64xf32>, vector<8x64xf32>, vector<8x64xf32> -> vector<8x192xf32>
    %88 = arith.truncf %87 : vector<8x192xf32> to vector<8x192xbf16>
    %cst_20 = arith.constant dense<0.000000e+00> : vector<8x256xf32>
    %89 = tpu.matmul %88, %6, %cst_20 {dimension_numbers = #tpu.dot_dimension_numbers<[1], [0], [0], [1], [0, 0, 1, 1], [], []>} : vector<8x192xbf16>, vector<192x256xbf16>, vector<8x256xf32> -> vector<8x256xf32>
    %90 = arith.addf %83, %89 : vector<8x256xf32>
    %91 = vector.extract_strided_slice %90 {offsets = [0, 0], sizes = [8, 128], strides = [1, 1]} : vector<8x256xf32> to vector<8x128xf32>
    %92 = vector.extract_strided_slice %90 {offsets = [0, 128], sizes = [8, 128], strides = [1, 1]} : vector<8x256xf32> to vector<8x128xf32>
    %93 = vector.extract_strided_slice %91 {offsets = [0, 0], sizes = [8, 64], strides = [1, 1]} : vector<8x128xf32> to vector<8x64xf32>
    %94 = arith.negf %93 : vector<8x64xf32>
    %95 = math.exp %94 : vector<8x64xf32>
    %cst_21 = arith.constant 1.000000e+00 : f32
    %96 = vector.broadcast %cst_21 : f32 to vector<8x64xf32>
    %97 = arith.addf %96, %95 : vector<8x64xf32>
    %98 = arith.divf %96, %97 : vector<8x64xf32>
    %c64_i32_22 = arith.constant 64 : i32
    %99 = tpu.dynamic_rotate %91 by %c64_i32_22 dim 1 : vector<8x128xf32>, i32 -> vector<8x128xf32>
    %100 = vector.extract_strided_slice %99 {offsets = [0, 0], sizes = [8, 64], strides = [1, 1]} : vector<8x128xf32> to vector<8x64xf32>
    %101 = arith.negf %100 : vector<8x64xf32>
    %102 = math.exp %101 : vector<8x64xf32>
    %cst_23 = arith.constant 1.000000e+00 : f32
    %103 = vector.broadcast %cst_23 : f32 to vector<8x64xf32>
    %104 = arith.addf %103, %102 : vector<8x64xf32>
    %105 = arith.divf %103, %104 : vector<8x64xf32>
    %106 = vector.extract_strided_slice %92 {offsets = [0, 0], sizes = [8, 64], strides = [1, 1]} : vector<8x128xf32> to vector<8x64xf32>
    %107 = math.tanh %106 : vector<8x64xf32>
    %c64_i32_24 = arith.constant 64 : i32
    %108 = tpu.dynamic_rotate %92 by %c64_i32_24 dim 1 : vector<8x128xf32>, i32 -> vector<8x128xf32>
    %109 = vector.extract_strided_slice %108 {offsets = [0, 0], sizes = [8, 64], strides = [1, 1]} : vector<8x128xf32> to vector<8x64xf32>
    %110 = arith.negf %109 : vector<8x64xf32>
    %111 = math.exp %110 : vector<8x64xf32>
    %cst_25 = arith.constant 1.000000e+00 : f32
    %112 = vector.broadcast %cst_25 : f32 to vector<8x64xf32>
    %113 = arith.addf %112, %111 : vector<8x64xf32>
    %114 = arith.divf %112, %113 : vector<8x64xf32>
    %115 = arith.mulf %105, %80 : vector<8x64xf32>
    %116 = arith.mulf %98, %107 : vector<8x64xf32>
    %117 = arith.addf %115, %116 : vector<8x64xf32>
    %118 = math.tanh %117 : vector<8x64xf32>
    %119 = arith.mulf %114, %118 : vector<8x64xf32>
    %120 = vector.extract_strided_slice %5 {offsets = [24, 0], sizes = [8, 256], strides = [1, 1]} : vector<64x256xf32> to vector<8x256xf32>
    %121 = arith.truncf %119 : vector<8x64xf32> to vector<8x64xbf16>
    %122 = arith.extf %121 : vector<8x64xbf16> to vector<8x64xf32>
    %123 = arith.subf %119, %122 : vector<8x64xf32>
    %124 = tpu.concatenate %119, %123, %119 in 1 : vector<8x64xf32>, vector<8x64xf32>, vector<8x64xf32> -> vector<8x192xf32>
    %125 = arith.truncf %124 : vector<8x192xf32> to vector<8x192xbf16>
    %cst_26 = arith.constant dense<0.000000e+00> : vector<8x256xf32>
    %126 = tpu.matmul %125, %6, %cst_26 {dimension_numbers = #tpu.dot_dimension_numbers<[1], [0], [0], [1], [0, 0, 1, 1], [], []>} : vector<8x192xbf16>, vector<192x256xbf16>, vector<8x256xf32> -> vector<8x256xf32>
    %127 = arith.addf %120, %126 : vector<8x256xf32>
    %128 = vector.extract_strided_slice %127 {offsets = [0, 0], sizes = [8, 128], strides = [1, 1]} : vector<8x256xf32> to vector<8x128xf32>
    %129 = vector.extract_strided_slice %127 {offsets = [0, 128], sizes = [8, 128], strides = [1, 1]} : vector<8x256xf32> to vector<8x128xf32>
    %130 = vector.extract_strided_slice %128 {offsets = [0, 0], sizes = [8, 64], strides = [1, 1]} : vector<8x128xf32> to vector<8x64xf32>
    %131 = arith.negf %130 : vector<8x64xf32>
    %132 = math.exp %131 : vector<8x64xf32>
    %cst_27 = arith.constant 1.000000e+00 : f32
    %133 = vector.broadcast %cst_27 : f32 to vector<8x64xf32>
    %134 = arith.addf %133, %132 : vector<8x64xf32>
    %135 = arith.divf %133, %134 : vector<8x64xf32>
    %c64_i32_28 = arith.constant 64 : i32
    %136 = tpu.dynamic_rotate %128 by %c64_i32_28 dim 1 : vector<8x128xf32>, i32 -> vector<8x128xf32>
    %137 = vector.extract_strided_slice %136 {offsets = [0, 0], sizes = [8, 64], strides = [1, 1]} : vector<8x128xf32> to vector<8x64xf32>
    %138 = arith.negf %137 : vector<8x64xf32>
    %139 = math.exp %138 : vector<8x64xf32>
    %cst_29 = arith.constant 1.000000e+00 : f32
    %140 = vector.broadcast %cst_29 : f32 to vector<8x64xf32>
    %141 = arith.addf %140, %139 : vector<8x64xf32>
    %142 = arith.divf %140, %141 : vector<8x64xf32>
    %143 = vector.extract_strided_slice %129 {offsets = [0, 0], sizes = [8, 64], strides = [1, 1]} : vector<8x128xf32> to vector<8x64xf32>
    %144 = math.tanh %143 : vector<8x64xf32>
    %c64_i32_30 = arith.constant 64 : i32
    %145 = tpu.dynamic_rotate %129 by %c64_i32_30 dim 1 : vector<8x128xf32>, i32 -> vector<8x128xf32>
    %146 = vector.extract_strided_slice %145 {offsets = [0, 0], sizes = [8, 64], strides = [1, 1]} : vector<8x128xf32> to vector<8x64xf32>
    %147 = arith.negf %146 : vector<8x64xf32>
    %148 = math.exp %147 : vector<8x64xf32>
    %cst_31 = arith.constant 1.000000e+00 : f32
    %149 = vector.broadcast %cst_31 : f32 to vector<8x64xf32>
    %150 = arith.addf %149, %148 : vector<8x64xf32>
    %151 = arith.divf %149, %150 : vector<8x64xf32>
    %152 = arith.mulf %142, %117 : vector<8x64xf32>
    %153 = arith.mulf %135, %144 : vector<8x64xf32>
    %154 = arith.addf %152, %153 : vector<8x64xf32>
    %155 = math.tanh %154 : vector<8x64xf32>
    %156 = arith.mulf %151, %155 : vector<8x64xf32>
    %157 = vector.extract_strided_slice %5 {offsets = [32, 0], sizes = [8, 256], strides = [1, 1]} : vector<64x256xf32> to vector<8x256xf32>
    %158 = arith.truncf %156 : vector<8x64xf32> to vector<8x64xbf16>
    %159 = arith.extf %158 : vector<8x64xbf16> to vector<8x64xf32>
    %160 = arith.subf %156, %159 : vector<8x64xf32>
    %161 = tpu.concatenate %156, %160, %156 in 1 : vector<8x64xf32>, vector<8x64xf32>, vector<8x64xf32> -> vector<8x192xf32>
    %162 = arith.truncf %161 : vector<8x192xf32> to vector<8x192xbf16>
    %cst_32 = arith.constant dense<0.000000e+00> : vector<8x256xf32>
    %163 = tpu.matmul %162, %6, %cst_32 {dimension_numbers = #tpu.dot_dimension_numbers<[1], [0], [0], [1], [0, 0, 1, 1], [], []>} : vector<8x192xbf16>, vector<192x256xbf16>, vector<8x256xf32> -> vector<8x256xf32>
    %164 = arith.addf %157, %163 : vector<8x256xf32>
    %165 = vector.extract_strided_slice %164 {offsets = [0, 0], sizes = [8, 128], strides = [1, 1]} : vector<8x256xf32> to vector<8x128xf32>
    %166 = vector.extract_strided_slice %164 {offsets = [0, 128], sizes = [8, 128], strides = [1, 1]} : vector<8x256xf32> to vector<8x128xf32>
    %167 = vector.extract_strided_slice %165 {offsets = [0, 0], sizes = [8, 64], strides = [1, 1]} : vector<8x128xf32> to vector<8x64xf32>
    %168 = arith.negf %167 : vector<8x64xf32>
    %169 = math.exp %168 : vector<8x64xf32>
    %cst_33 = arith.constant 1.000000e+00 : f32
    %170 = vector.broadcast %cst_33 : f32 to vector<8x64xf32>
    %171 = arith.addf %170, %169 : vector<8x64xf32>
    %172 = arith.divf %170, %171 : vector<8x64xf32>
    %c64_i32_34 = arith.constant 64 : i32
    %173 = tpu.dynamic_rotate %165 by %c64_i32_34 dim 1 : vector<8x128xf32>, i32 -> vector<8x128xf32>
    %174 = vector.extract_strided_slice %173 {offsets = [0, 0], sizes = [8, 64], strides = [1, 1]} : vector<8x128xf32> to vector<8x64xf32>
    %175 = arith.negf %174 : vector<8x64xf32>
    %176 = math.exp %175 : vector<8x64xf32>
    %cst_35 = arith.constant 1.000000e+00 : f32
    %177 = vector.broadcast %cst_35 : f32 to vector<8x64xf32>
    %178 = arith.addf %177, %176 : vector<8x64xf32>
    %179 = arith.divf %177, %178 : vector<8x64xf32>
    %180 = vector.extract_strided_slice %166 {offsets = [0, 0], sizes = [8, 64], strides = [1, 1]} : vector<8x128xf32> to vector<8x64xf32>
    %181 = math.tanh %180 : vector<8x64xf32>
    %c64_i32_36 = arith.constant 64 : i32
    %182 = tpu.dynamic_rotate %166 by %c64_i32_36 dim 1 : vector<8x128xf32>, i32 -> vector<8x128xf32>
    %183 = vector.extract_strided_slice %182 {offsets = [0, 0], sizes = [8, 64], strides = [1, 1]} : vector<8x128xf32> to vector<8x64xf32>
    %184 = arith.negf %183 : vector<8x64xf32>
    %185 = math.exp %184 : vector<8x64xf32>
    %cst_37 = arith.constant 1.000000e+00 : f32
    %186 = vector.broadcast %cst_37 : f32 to vector<8x64xf32>
    %187 = arith.addf %186, %185 : vector<8x64xf32>
    %188 = arith.divf %186, %187 : vector<8x64xf32>
    %189 = arith.mulf %179, %154 : vector<8x64xf32>
    %190 = arith.mulf %172, %181 : vector<8x64xf32>
    %191 = arith.addf %189, %190 : vector<8x64xf32>
    %192 = math.tanh %191 : vector<8x64xf32>
    %193 = arith.mulf %188, %192 : vector<8x64xf32>
    %194 = vector.extract_strided_slice %5 {offsets = [40, 0], sizes = [8, 256], strides = [1, 1]} : vector<64x256xf32> to vector<8x256xf32>
    %195 = arith.truncf %193 : vector<8x64xf32> to vector<8x64xbf16>
    %196 = arith.extf %195 : vector<8x64xbf16> to vector<8x64xf32>
    %197 = arith.subf %193, %196 : vector<8x64xf32>
    %198 = tpu.concatenate %193, %197, %193 in 1 : vector<8x64xf32>, vector<8x64xf32>, vector<8x64xf32> -> vector<8x192xf32>
    %199 = arith.truncf %198 : vector<8x192xf32> to vector<8x192xbf16>
    %cst_38 = arith.constant dense<0.000000e+00> : vector<8x256xf32>
    %200 = tpu.matmul %199, %6, %cst_38 {dimension_numbers = #tpu.dot_dimension_numbers<[1], [0], [0], [1], [0, 0, 1, 1], [], []>} : vector<8x192xbf16>, vector<192x256xbf16>, vector<8x256xf32> -> vector<8x256xf32>
    %201 = arith.addf %194, %200 : vector<8x256xf32>
    %202 = vector.extract_strided_slice %201 {offsets = [0, 0], sizes = [8, 128], strides = [1, 1]} : vector<8x256xf32> to vector<8x128xf32>
    %203 = vector.extract_strided_slice %201 {offsets = [0, 128], sizes = [8, 128], strides = [1, 1]} : vector<8x256xf32> to vector<8x128xf32>
    %204 = vector.extract_strided_slice %202 {offsets = [0, 0], sizes = [8, 64], strides = [1, 1]} : vector<8x128xf32> to vector<8x64xf32>
    %205 = arith.negf %204 : vector<8x64xf32>
    %206 = math.exp %205 : vector<8x64xf32>
    %cst_39 = arith.constant 1.000000e+00 : f32
    %207 = vector.broadcast %cst_39 : f32 to vector<8x64xf32>
    %208 = arith.addf %207, %206 : vector<8x64xf32>
    %209 = arith.divf %207, %208 : vector<8x64xf32>
    %c64_i32_40 = arith.constant 64 : i32
    %210 = tpu.dynamic_rotate %202 by %c64_i32_40 dim 1 : vector<8x128xf32>, i32 -> vector<8x128xf32>
    %211 = vector.extract_strided_slice %210 {offsets = [0, 0], sizes = [8, 64], strides = [1, 1]} : vector<8x128xf32> to vector<8x64xf32>
    %212 = arith.negf %211 : vector<8x64xf32>
    %213 = math.exp %212 : vector<8x64xf32>
    %cst_41 = arith.constant 1.000000e+00 : f32
    %214 = vector.broadcast %cst_41 : f32 to vector<8x64xf32>
    %215 = arith.addf %214, %213 : vector<8x64xf32>
    %216 = arith.divf %214, %215 : vector<8x64xf32>
    %217 = vector.extract_strided_slice %203 {offsets = [0, 0], sizes = [8, 64], strides = [1, 1]} : vector<8x128xf32> to vector<8x64xf32>
    %218 = math.tanh %217 : vector<8x64xf32>
    %c64_i32_42 = arith.constant 64 : i32
    %219 = tpu.dynamic_rotate %203 by %c64_i32_42 dim 1 : vector<8x128xf32>, i32 -> vector<8x128xf32>
    %220 = vector.extract_strided_slice %219 {offsets = [0, 0], sizes = [8, 64], strides = [1, 1]} : vector<8x128xf32> to vector<8x64xf32>
    %221 = arith.negf %220 : vector<8x64xf32>
    %222 = math.exp %221 : vector<8x64xf32>
    %cst_43 = arith.constant 1.000000e+00 : f32
    %223 = vector.broadcast %cst_43 : f32 to vector<8x64xf32>
    %224 = arith.addf %223, %222 : vector<8x64xf32>
    %225 = arith.divf %223, %224 : vector<8x64xf32>
    %226 = arith.mulf %216, %191 : vector<8x64xf32>
    %227 = arith.mulf %209, %218 : vector<8x64xf32>
    %228 = arith.addf %226, %227 : vector<8x64xf32>
    %229 = math.tanh %228 : vector<8x64xf32>
    %230 = arith.mulf %225, %229 : vector<8x64xf32>
    %231 = vector.extract_strided_slice %5 {offsets = [48, 0], sizes = [8, 256], strides = [1, 1]} : vector<64x256xf32> to vector<8x256xf32>
    %232 = arith.truncf %230 : vector<8x64xf32> to vector<8x64xbf16>
    %233 = arith.extf %232 : vector<8x64xbf16> to vector<8x64xf32>
    %234 = arith.subf %230, %233 : vector<8x64xf32>
    %235 = tpu.concatenate %230, %234, %230 in 1 : vector<8x64xf32>, vector<8x64xf32>, vector<8x64xf32> -> vector<8x192xf32>
    %236 = arith.truncf %235 : vector<8x192xf32> to vector<8x192xbf16>
    %cst_44 = arith.constant dense<0.000000e+00> : vector<8x256xf32>
    %237 = tpu.matmul %236, %6, %cst_44 {dimension_numbers = #tpu.dot_dimension_numbers<[1], [0], [0], [1], [0, 0, 1, 1], [], []>} : vector<8x192xbf16>, vector<192x256xbf16>, vector<8x256xf32> -> vector<8x256xf32>
    %238 = arith.addf %231, %237 : vector<8x256xf32>
    %239 = vector.extract_strided_slice %238 {offsets = [0, 0], sizes = [8, 128], strides = [1, 1]} : vector<8x256xf32> to vector<8x128xf32>
    %240 = vector.extract_strided_slice %238 {offsets = [0, 128], sizes = [8, 128], strides = [1, 1]} : vector<8x256xf32> to vector<8x128xf32>
    %241 = vector.extract_strided_slice %239 {offsets = [0, 0], sizes = [8, 64], strides = [1, 1]} : vector<8x128xf32> to vector<8x64xf32>
    %242 = arith.negf %241 : vector<8x64xf32>
    %243 = math.exp %242 : vector<8x64xf32>
    %cst_45 = arith.constant 1.000000e+00 : f32
    %244 = vector.broadcast %cst_45 : f32 to vector<8x64xf32>
    %245 = arith.addf %244, %243 : vector<8x64xf32>
    %246 = arith.divf %244, %245 : vector<8x64xf32>
    %c64_i32_46 = arith.constant 64 : i32
    %247 = tpu.dynamic_rotate %239 by %c64_i32_46 dim 1 : vector<8x128xf32>, i32 -> vector<8x128xf32>
    %248 = vector.extract_strided_slice %247 {offsets = [0, 0], sizes = [8, 64], strides = [1, 1]} : vector<8x128xf32> to vector<8x64xf32>
    %249 = arith.negf %248 : vector<8x64xf32>
    %250 = math.exp %249 : vector<8x64xf32>
    %cst_47 = arith.constant 1.000000e+00 : f32
    %251 = vector.broadcast %cst_47 : f32 to vector<8x64xf32>
    %252 = arith.addf %251, %250 : vector<8x64xf32>
    %253 = arith.divf %251, %252 : vector<8x64xf32>
    %254 = vector.extract_strided_slice %240 {offsets = [0, 0], sizes = [8, 64], strides = [1, 1]} : vector<8x128xf32> to vector<8x64xf32>
    %255 = math.tanh %254 : vector<8x64xf32>
    %c64_i32_48 = arith.constant 64 : i32
    %256 = tpu.dynamic_rotate %240 by %c64_i32_48 dim 1 : vector<8x128xf32>, i32 -> vector<8x128xf32>
    %257 = vector.extract_strided_slice %256 {offsets = [0, 0], sizes = [8, 64], strides = [1, 1]} : vector<8x128xf32> to vector<8x64xf32>
    %258 = arith.negf %257 : vector<8x64xf32>
    %259 = math.exp %258 : vector<8x64xf32>
    %cst_49 = arith.constant 1.000000e+00 : f32
    %260 = vector.broadcast %cst_49 : f32 to vector<8x64xf32>
    %261 = arith.addf %260, %259 : vector<8x64xf32>
    %262 = arith.divf %260, %261 : vector<8x64xf32>
    %263 = arith.mulf %253, %228 : vector<8x64xf32>
    %264 = arith.mulf %246, %255 : vector<8x64xf32>
    %265 = arith.addf %263, %264 : vector<8x64xf32>
    %266 = math.tanh %265 : vector<8x64xf32>
    %267 = arith.mulf %262, %266 : vector<8x64xf32>
    %268 = vector.extract_strided_slice %5 {offsets = [56, 0], sizes = [8, 256], strides = [1, 1]} : vector<64x256xf32> to vector<8x256xf32>
    %269 = arith.truncf %267 : vector<8x64xf32> to vector<8x64xbf16>
    %270 = arith.extf %269 : vector<8x64xbf16> to vector<8x64xf32>
    %271 = arith.subf %267, %270 : vector<8x64xf32>
    %272 = tpu.concatenate %267, %271, %267 in 1 : vector<8x64xf32>, vector<8x64xf32>, vector<8x64xf32> -> vector<8x192xf32>
    %273 = arith.truncf %272 : vector<8x192xf32> to vector<8x192xbf16>
    %cst_50 = arith.constant dense<0.000000e+00> : vector<8x256xf32>
    %274 = tpu.matmul %273, %6, %cst_50 {dimension_numbers = #tpu.dot_dimension_numbers<[1], [0], [0], [1], [0, 0, 1, 1], [], []>} : vector<8x192xbf16>, vector<192x256xbf16>, vector<8x256xf32> -> vector<8x256xf32>
    %275 = arith.addf %268, %274 : vector<8x256xf32>
    %276 = vector.extract_strided_slice %275 {offsets = [0, 0], sizes = [8, 128], strides = [1, 1]} : vector<8x256xf32> to vector<8x128xf32>
    %277 = vector.extract_strided_slice %275 {offsets = [0, 128], sizes = [8, 128], strides = [1, 1]} : vector<8x256xf32> to vector<8x128xf32>
    %278 = vector.extract_strided_slice %276 {offsets = [0, 0], sizes = [8, 64], strides = [1, 1]} : vector<8x128xf32> to vector<8x64xf32>
    %279 = arith.negf %278 : vector<8x64xf32>
    %280 = math.exp %279 : vector<8x64xf32>
    %cst_51 = arith.constant 1.000000e+00 : f32
    %281 = vector.broadcast %cst_51 : f32 to vector<8x64xf32>
    %282 = arith.addf %281, %280 : vector<8x64xf32>
    %283 = arith.divf %281, %282 : vector<8x64xf32>
    %c64_i32_52 = arith.constant 64 : i32
    %284 = tpu.dynamic_rotate %276 by %c64_i32_52 dim 1 : vector<8x128xf32>, i32 -> vector<8x128xf32>
    %285 = vector.extract_strided_slice %284 {offsets = [0, 0], sizes = [8, 64], strides = [1, 1]} : vector<8x128xf32> to vector<8x64xf32>
    %286 = arith.negf %285 : vector<8x64xf32>
    %287 = math.exp %286 : vector<8x64xf32>
    %cst_53 = arith.constant 1.000000e+00 : f32
    %288 = vector.broadcast %cst_53 : f32 to vector<8x64xf32>
    %289 = arith.addf %288, %287 : vector<8x64xf32>
    %290 = arith.divf %288, %289 : vector<8x64xf32>
    %291 = vector.extract_strided_slice %277 {offsets = [0, 0], sizes = [8, 64], strides = [1, 1]} : vector<8x128xf32> to vector<8x64xf32>
    %292 = math.tanh %291 : vector<8x64xf32>
    %c64_i32_54 = arith.constant 64 : i32
    %293 = tpu.dynamic_rotate %277 by %c64_i32_54 dim 1 : vector<8x128xf32>, i32 -> vector<8x128xf32>
    %294 = vector.extract_strided_slice %293 {offsets = [0, 0], sizes = [8, 64], strides = [1, 1]} : vector<8x128xf32> to vector<8x64xf32>
    %295 = arith.negf %294 : vector<8x64xf32>
    %296 = math.exp %295 : vector<8x64xf32>
    %cst_55 = arith.constant 1.000000e+00 : f32
    %297 = vector.broadcast %cst_55 : f32 to vector<8x64xf32>
    %298 = arith.addf %297, %296 : vector<8x64xf32>
    %299 = arith.divf %297, %298 : vector<8x64xf32>
    %300 = arith.mulf %290, %265 : vector<8x64xf32>
    %301 = arith.mulf %283, %292 : vector<8x64xf32>
    %302 = arith.addf %300, %301 : vector<8x64xf32>
    %303 = math.tanh %302 : vector<8x64xf32>
    %304 = arith.mulf %299, %303 : vector<8x64xf32>
    %305 = tpu.concatenate %304, %302 in 1 : vector<8x64xf32>, vector<8x64xf32> -> vector<8x128xf32>
    %c0_56 = arith.constant 0 : index
    %c0_57 = arith.constant 0 : index
    %306 = vector.load %arg4[%c0_56, %c0_57] : memref<8x128xf32, #tpu.memory_space<vmem>>, vector<8x128xf32>
    tpu.vector_store %arg4[%c0_56, %c0_57], %305 {strides = array<i32>} : memref<8x128xf32, #tpu.memory_space<vmem>>, vector<8x128xf32>,
    return
  }
}

</mosaic_0001>

<bundles_post_ra>
// kernel: encoder.1
= control target key start
LH: loop header
LB: loop body
LE: loop exit
PB: predicated region body
PF: predicated region fallthrough
CT: control target
= control target key end

     0   :  { %v2158_v3 = vmov 0.0   ;;  %vm46_vm0 = vcmask 261120   ;;  %s2160_s14 = smov 64   ;;  %vm1102_vm1 = vcmask 523264   ;;  %s2996_s1 = inlined_call_operand.vmem [shape: f32[32,256], index: 1, kind: input, shape index: {}]   ;;  %s2997_s0 = inlined_call_operand.vmem [shape: f32[64,32], index: 0, kind: input, shape index: {}]   ;;  %s2998_s3 = inlined_call_operand.vmem [shape: bf16[192,256], index: 3, kind: input, shape index: {}]   ;;  %s2999_s2 = inlined_call_operand.vmem [shape: f32[1,256], index: 2, kind: input, shape index: {}]   ;;  %s3000_s4 = inlined_call_operand.vmem [shape: f32[8,128], index: 4, kind: output, shape index: {}]  }
   0x1   :  { %v27_v0 = vld [vmem:[%s2996_s1 + $0x8] sm:$0xff]  ;;  %v29_v1 = vld [vmem:[%s2996_s1 + $0x18] sm:$0xff]  ;;  %v26_v2 = vld [vmem:[%s2996_s1] sm:$0xff]  ;;  %143 = vmatprep.mubr.f32.mxu0 %v2158_v3 }
   0x2   :  { %v71_v4 = vand.u32 4294901760, %v27_v0  ;;  %v75_v5 = vand.u32 4294901760, %v29_v1  ;;  %v28_v6 = vld [vmem:[%s2996_s1 + $0x10] sm:$0xff]  ;;  %v73_v7 = vand.u32 4294901760, %v26_v2  ;;  %v31_v8 = vld [vmem:[%s2996_s1 + $0x28] sm:$0xff]  ;;  %v33_v9 = vld [vmem:[%s2996_s1 + $0x38] sm:$0xff] }
   0x3   :  { %v77_v10 = vand.u32 4294901760, %v28_v6  ;;  %v79_v11 = vand.u32 4294901760, %v31_v8  ;;  %v83_v12 = vand.u32 4294901760, %v33_v9  ;;  %v30_v13 = vld [vmem:[%s2996_s1 + $0x20] sm:$0xff]  ;;  %v32_v14 = vld [vmem:[%s2996_s1 + $0x30] sm:$0xff]  ;;  %v19_v24 = vld [vmem:[%s2997_s0 + $0x8] sm:$0xff] }
   0x4   :  { %v18_v15 = vld [vmem:[%s2997_s0] sm:$0xff]  ;;  %v2214_v16 = vpack.c.bf16 %v75_v5, %v71_v4  ;;  %v2216_v17 = vsub.f32 %v27_v0, %v71_v4  ;;  %v2218_v18 = vsub.f32 %v29_v1, %v75_v5  ;;  %v2220_v19 = vsub.f32 %v26_v2, %v73_v7  ;;  %v20_v25 = vld [vmem:[%s2997_s0 + $0x10] sm:$0xff]  ;;  %v21_v30 = vld [vmem:[%s2997_s0 + $0x18] sm:$0xff] }
   0x5   :  { %v2222_v20 = vpack.c.bf16 %v77_v10, %v73_v7  ;;  %v2224_v21 = vsub.f32 %v28_v6, %v77_v10  ;;  %v2226_v22 = vpack.c.bf16 %v83_v12, %v79_v11  ;;  %v2228_v23 = vsub.f32 %v31_v8, %v79_v11  ;;  %v2252_v35 = vld [vmem:[%s2998_s3 + $0x4] ss:$8 sps:$4 sm:$0xff]   ;;  %v2265_v40 = vld [vmem:[%s2998_s3] ss:$8 sps:$4 sm:$0xff]   ;;  %v2286_v46 = vld [vmem:[%s2998_s3 + $0x14] ss:$8 sps:$4 sm:$0xff]  }
   0x6   :  { %1824 = vmatprep.subr.bf16.mxu0 %v2214_v16  ;;  %v2237_v26 = vsub.f32 %v33_v9, %v83_v12  ;;  %v81_v27 = vand.u32 4294901760, %v30_v13  ;;  %v85_v28 = vand.u32 4294901760, %v32_v14  ;;  %v48_v29 = vsel %vm46_vm0, %v18_v15, 0  ;;  %v22_v45 = vld [vmem:[%s2997_s0 + $0x20] sm:$0xff]  ;;  %1106 = vmatprep.subr.bf16.mxu1 %v2252_v35  ;;  %v2298_v51 = vld [vmem:[%s2998_s3 + $0x10] ss:$8 sps:$4 sm:$0xff]  }
   0x7   :  { %1826 = vmatpush1.bf16.msra.mxu0 %v2222_v20  ;;  %v2244_v31 = vand.u32 4294901760, %v48_v29  ;;  %v234_v32 = vand.u32 4294901760, %v2216_v17  ;;  %v246_v33 = vand.u32 4294901760, %v2218_v18  ;;  %v240_v34 = vand.u32 4294901760, %v2220_v19  ;;  %1107 = vmatpush1.bf16.msra.mxu1 %v2265_v40  ;;  %v2306_v56 = vld [vmem:[%s2998_s3 + $0x24] ss:$8 sps:$4 sm:$0xff]  }
   0x8   :  { %1828 = vmatprep.subr.bf16.mxu0 %v2226_v22  ;;  %v2255_v36 = vpack.c.bf16 %v85_v28, %v81_v27  ;;  %v2257_v37 = vsub.f32 %v30_v13, %v81_v27  ;;  %v2259_v38 = vsub.f32 %v32_v14, %v85_v28  ;;  %v252_v39 = vand.u32 4294901760, %v2224_v21  ;;  %1108 = vmatprep.subr.bf16.mxu1 %v2286_v46  ;;  %v23_v1 = vld [vmem:[%s2997_s0 + $0x28] sm:$0xff] }
   0x9   :  { %v2268_v41 = vsub.f32 %v48_v29, %v2244_v31  ;;  %v235_v42 = vsub.f32 %v2216_v17, %v234_v32  ;;  %v247_v43 = vsub.f32 %v2218_v18, %v246_v33  ;;  %v241_v44 = vsub.f32 %v2220_v19, %v240_v34  ;;  %v2342_v11 = vld [vmem:[%s2998_s3 + $0x20] ss:$8 sps:$4 sm:$0xff]  }
   0xa   :  { %v253_v47 = vsub.f32 %v2224_v21, %v252_v39  ;;  %v51_v48 = vsel %vm46_vm0, %v19_v24, 0  ;;  %v54_v49 = vsel %vm46_vm0, %v20_v25, 0  ;;  %v57_v50 = vsel %vm46_vm0, %v21_v30, 0  ;;  %v2351_v24 = vld [vmem:[%s2998_s3 + $0x34] ss:$8 sps:$4 sm:$0xff]  }
   0xb   :  { %1830 = vmatpush1.bf16.msra.mxu0 %v2255_v36  ;;  %v146_v52 = vand.u32 4294901760, %v2268_v41  ;;  %v236_v53 = vand.u32 4294901760, %v235_v42  ;;  %v248_v54 = vand.u32 4294901760, %v247_v43  ;;  %v242_v55 = vand.u32 4294901760, %v241_v44  ;;  %1109 = vmatpush1.bf16.msra.mxu1 %v2298_v51  ;;  %v24_v30 = vld [vmem:[%s2997_s0 + $0x30] sm:$0xff] }
   0xc   :  { %v254_v57 = vand.u32 4294901760, %v253_v47  ;;  %v2308_v58 = vand.u32 4294901760, %v51_v48  ;;  %v2310_v59 = vand.u32 4294901760, %v54_v49  ;;  %v2312_v60 = vand.u32 4294901760, %v57_v50  ;;  %1110 = vmatprep.subr.bf16.mxu1 %v2306_v56 }
   0xd   :  { %v147_v61 = vsub.f32 %v2268_v41, %v146_v52  ;;  %v1831_v62 = vpack.c.bf16 %v248_v54, %v236_v53  ;;  %v60_v63 = vsel %vm46_vm0, %v22_v45, 0  ;;  %v258_v0 = vand.u32 4294901760, %v2228_v23 }
   0xe   :  { %v1833_v2 = vpack.c.bf16 %v254_v57, %v242_v55  ;;  %v2323_v4 = vsub.f32 %v51_v48, %v2308_v58  ;;  %v2326_v5 = vsub.f32 %v54_v49, %v2310_v59  ;;  %v2329_v6 = vsub.f32 %v57_v50, %v2312_v60  ;;  %v25_v49 = vld [vmem:[%s2997_s0 + $0x38] sm:$0xff] }
   0xf   :  { %v148_v7 = vand.u32 4294901760, %v147_v61  ;;  %1832 = vmatprep.subr.bf16.mxu0 %v1831_v62  ;;  %v2332_v8 = vand.u32 4294901760, %v60_v63  ;;  %v259_v9 = vsub.f32 %v2228_v23, %v258_v0  ;;  %v270_v10 = vand.u32 4294901760, %v2237_v26  ;;  %1111 = vmatpush1.bf16.msra.mxu1 %v2342_v11  ;;  %v2385_v57 = vld [vmem:[%s2998_s3 + $0x30] ss:$8 sps:$4 sm:$0xff]  }
  0x10   :  { %v157_v12 = vand.u32 4294901760, %v2323_v4  ;;  %v168_v13 = vand.u32 4294901760, %v2326_v5  ;;  %v3001_v14 = vand.u32 4294901760, %v2329_v6  ;;  %v264_v15 = vand.u32 4294901760, %v2257_v37  ;;  %1112 = vmatprep.subr.bf16.mxu1 %v2351_v24 }
  0x11   :  { %149 = vmatmul.mubr.f32.vlgmr.msra.gmra.mrb[0].mxu0 %v148_v7  ;;  %v2354_v25 = vsub.f32 %v60_v63, %v2332_v8  ;;  %v260_v27 = vand.u32 4294901760, %v259_v9  ;;  %v271_v28 = vsub.f32 %v2237_v26, %v270_v10  ;;  %v276_v29 = vand.u32 4294901760, %v2259_v38 }
  0x12   :  { %1834 = vmatpush1.bf16.msra.mxu0 %v1833_v2  ;;  %154 = vmatprep.mubr.f32.mxu0 %v2158_v3  ;;  %v158_v42 = vsub.f32 %v2323_v4, %v157_v12  ;;  %v169_v43 = vsub.f32 %v2326_v5, %v168_v13  ;;  %v63_v44 = vsel %vm46_vm0, %v23_v1, 0  ;;  %v265_v47 = vsub.f32 %v2257_v37, %v264_v15 }
  0x13   :  { %v272_v45 = vand.u32 4294901760, %v271_v28  ;;  %v277_v48 = vsub.f32 %v2259_v38, %v276_v29  ;;  %v180_v53 = vsub.f32 %v2329_v6, %v3001_v14  ;;  %v190_v54 = vand.u32 4294901760, %v2354_v25  ;;  %1113 = vmatpush1.bf16.msra.mxu1 %v2385_v57 }
  0x14   :  { %v159_v50 = vand.u32 4294901760, %v158_v42  ;;  %v2379_v55 = vand.u32 4294901760, %v63_v44  ;;  %v170_v61 = vand.u32 4294901760, %v169_v43  ;;  %v266_v63 = vand.u32 4294901760, %v265_v47 }
  0x15   :  { %v1835_v62 = vpack.c.bf16 %v272_v45, %v260_v27  ;;  %v278_v1 = vand.u32 4294901760, %v277_v48  ;;  %v66_v7 = vsel %vm46_vm0, %v24_v30, 0  ;;  %v69_v9 = vsel %vm46_vm0, %v25_v49, 0  ;;  %v2400_v27 = vld [vmem:[%s2998_s3 + $0x44] ss:$8 sps:$4 sm:$0xff]  }
  0x16   :  { %160 = vmatmul.mubr.f32.gmra.mrb[2].mxu0 %v159_v50  ;;  %v2388_v2 = vsub.f32 %v63_v44, %v2379_v55  ;;  %v1839_v28 = vpack.c.bf16 %v2218_v18, %v2216_v17  ;;  %v2395_v14 = vand.u32 4294901760, %v66_v7  ;;  %v181_v43 = vand.u32 4294901760, %v180_v53  ;;  %v2406_v30 = vld [vmem:[%s2998_s3 + $0x40] ss:$8 sps:$4 sm:$0xff]   ;;  %v2428_v49 = vld [vmem:[%s2998_s3 + $0x54] ss:$8 sps:$4 sm:$0xff]   ;;  %1114 = vmatprep.subr.bf16.mxu1 %v2400_v27 }
  0x17   :  { %165 = vmatprep.mubr.f32.mxu0 %v2158_v3  ;;  %1836 = vmatprep.subr.bf16.mxu0 %v1835_v62  ;;  %v1837_v42 = vpack.c.bf16 %v278_v1, %v266_v63  ;;  %v191_v44 = vsub.f32 %v2354_v25, %v190_v54  ;;  %v2411_v45 = vand.u32 4294901760, %v69_v9  ;;  %v2417_v47 = vpack.c.bf16 %v246_v33, %v234_v32  ;;  %v2446_v33 = vld [vmem:[%s2998_s3 + $0x50] ss:$8 sps:$4 sm:$0xff]   ;;  %v2472_v53 = vld [vmem:[%s2998_s3 + $0x74] ss:$8 sps:$4 sm:$0xff]  }
  0x18   :  { %v2423_v48 = vpack.c.bf16 %v252_v39, %v240_v34  ;;  %v201_v50 = vand.u32 4294901760, %v2388_v2  ;;  %v2432_v17 = vsub.f32 %v66_v7, %v2395_v14  ;;  %v2436_v18 = vpack.c.bf16 %v270_v10, %v258_v0  ;;  %1115 = vmatpush1.bf16.msra.mxu1 %v2406_v30  ;;  %v2452_v34 = vld [vmem:[%s2998_s3 + $0x64] ss:$8 sps:$4 sm:$0xff]   ;;  %v2483_v1 = vld [vmem:[%s2998_s3 + $0x70] ss:$8 sps:$4 sm:$0xff]  }
  0x19   :  { %1838 = vmatpush1.bf16.msra.mxu0 %v1837_v42  ;;  %v2438_v32 = vpack.c.bf16 %v276_v29, %v264_v15  ;;  %1116 = vmatprep.subr.bf16.mxu1 %v2428_v49  ;;  %v192_v39 = vand.u32 4294901760, %v191_v44  ;;  %v2459_v15 = vsub.f32 %v69_v9, %v2411_v45  ;;  %v2466_v29 = vld [vmem:[%s2998_s3 + $0x60] ss:$8 sps:$4 sm:$0xff]   ;;  %v2489_v7 = vld [vmem:[%s2998_s3 + $0x84] ss:$8 sps:$4 sm:$0xff]  }
  0x1a   :  { %171 = vmatmul.mubr.f32.gmra.mrb[4].mxu0 %v170_v61  ;;  %1840 = vmatprep.subr.bf16.mxu0 %v1839_v28  ;;  %v202_v0 = vsub.f32 %v2388_v2, %v201_v50  ;;  %v212_v10 = vand.u32 4294901760, %v2432_v17  ;;  %v2499_v42 = vld [vmem:[%s2998_s3 + $0x80] ss:$8 sps:$4 sm:$0xff]  }
  0x1b   :  { %176 = vmatprep.mubr.f32.mxu0 %v2158_v3  ;;  %v223_v63 = vand.u32 4294901760, %v2459_v15 }
  0x1c   :  { %1117 = vmatpush1.bf16.msra.mxu1 %v2446_v33  ;;  %v203_v61 = vand.u32 4294901760, %v202_v0  ;;  %v213_v62 = vsub.f32 %v2432_v17, %v212_v10  ;;  %v2518_v0 = vld [vmem:[%s2998_s3 + $0xa4] ss:$8 sps:$4 sm:$0xff]  }
  0x1d   :  { %1118 = vmatprep.subr.bf16.mxu1 %v2452_v34  ;;  %v224_v28 = vsub.f32 %v2459_v15, %v223_v63 }
  0x1e   :  { %182 = vmatmul.mubr.f32.gmra.mrb[6].mxu0 %v181_v43  ;;  %v214_v9 = vand.u32 4294901760, %v213_v62  ;;  %v2505_v43 = vld [vmem:[%s2998_s3 + $0x94] ss:$8 sps:$4 sm:$0xff]   ;;  %v1843_v62 = vpack.c.bf16 %v2237_v26, %v2228_v23  ;;  %v3002_v23 = vand.u32 4294901760, %v2329_v6  ;;  %v36_v26 = vlaneseq }
  0x1f   :  { %187 = vmatprep.mubr.f32.mxu0 %v2158_v3  ;;  %v225_v44 = vand.u32 4294901760, %v224_v28  ;;  %v2159_v28 = vmov 0.0|0.0  }
  0x20   :  { %1119 = vmatpush1.bf16.msra.mxu1 %v2466_v29  ;;  %1138 = vmatprep.mubr.bf16.mxu1 %v2159_v28 }
  0x21   :  { %1120 = vmatprep.subr.bf16.mxu1 %v2472_v53 }
  0x22   :  { %193 = vmatmul.mubr.f32.gmra.mrb[8].mxu0 %v192_v39  ;;  %v2512_v39 = vld [vmem:[%s2998_s3 + $0x90] ss:$8 sps:$4 sm:$0xff]  }
  0x23   :  { %198 = vmatprep.mubr.f32.mxu0 %v2158_v3 }
  0x24   :  { %1121 = vmatpush1.bf16.msra.mxu1 %v2483_v1 }
  0x25   :  { %1122 = vmatprep.subr.bf16.mxu1 %v2489_v7 }
  0x26   :  { %204 = vmatmul.mubr.f32.gmra.mrb[10].mxu0 %v203_v61  ;;  %v1841_v61 = vpack.c.bf16 %v2224_v21, %v2220_v19  ;;  %v1845_v19 = vpack.c.bf16 %v2259_v38, %v2257_v37  ;;  %v2545_v21 = vld [vmem:[%s2998_s3 + $0xb0] ss:$8 sps:$4 sm:$0xff]   ;;  %v34_v37 = vld [vmem:[%s2999_s2] sm:$0x3] }
  0x27   :  { %209 = vmatprep.mubr.f32.mxu0 %v2158_v3 }
  0x28   :  { %1123 = vmatpush1.bf16.msra.mxu1 %v2499_v42 }
  0x29   :  { %1124 = vmatprep.subr.bf16.mxu1 %v2505_v43 }
  0x2a   :  { %215 = vmatmul.mubr.f32.gmra.mrb[12].mxu0 %v214_v9  ;;  %v2529_v9 = vld [vmem:[%s2998_s3 + $0xa0] ss:$8 sps:$4 sm:$0xff]  }
  0x2b   :  { %220 = vmatprep.mubr.f32.mxu0 %v2158_v3 }
  0x2c   :  { %1125 = vmatpush1.bf16.msra.mxu1 %v2512_v39 }
  0x2d   :  { %1126 = vmatprep.subr.bf16.mxu1 %v2518_v0 }
  0x2e   :  { %226 = vmatmul.mubr.f32.gmra.mrb[14].mxu0 %v225_v44  ;;  %v2535_v44 = vld [vmem:[%s2998_s3 + $0xb4] ss:$8 sps:$4 sm:$0xff]  }
  0x2f   :  { %336 = vmatprep.mubr.f32.mxu0 %v2158_v3 }
  0x30   :  { %1127 = vmatpush1.bf16.msra.mxu1 %v2529_v9 }
  0x31   :  { %1128 = vmatprep.subr.bf16.mxu1 %v2535_v44 }
  0x32   :  { %338 = vmatmul.mubr.f32.vlgmr.msra.gmra.mrb[0].mxu0 %v2244_v31 }
  0x33   :  { %1842 = vmatpush1.bf16.msra.mxu0 %v1841_v61  ;;  %343 = vmatprep.mubr.f32.mxu0 %v2158_v3 }
  0x34   :  { %1844 = vmatprep.subr.bf16.mxu0 %v1843_v62  ;;  %1129 = vmatpush1.bf16.msra.mxu1 %v2545_v21 }
  0x35   :  { %1189 = vmatprep.subr.bf16.mxu1 %v2252_v35 }
  0x36   :  { %345 = vmatmul.mubr.f32.gmra.mrb[2].mxu0 %v2308_v58 }
  0x37   :  { %350 = vmatprep.mubr.f32.mxu0 %v2158_v3  ;;  %1846 = vmatpush1.bf16.msra.mxu0 %v1845_v19 }
  0x38   :  { %1848 = vmatprep.subr.bf16.mxu0 %v2214_v16  ;;  %1139 = vmatmul.mubr.bf16.vlgmr.msra.gmra.mrb[0].mxu1 %v2159_v28 }
  0x39   :  { %1190 = vmatpush1.bf16.msra.mxu1 %v2265_v40 }
  0x3a   :  { %352 = vmatmul.mubr.f32.gmra.mrb[4].mxu0 %v2310_v59  ;;  %1191 = vmatprep.subr.bf16.mxu1 %v2286_v46 }
  0x3b   :  { %357 = vmatprep.mubr.f32.mxu0 %v2158_v3 }
  0x3d   :  { %1192 = vmatpush1.bf16.msra.mxu1 %v2298_v51 }
  0x3e   :  { %359 = vmatmul.mubr.f32.gmra.mrb[6].mxu0 %v2312_v60  ;;  %1193 = vmatprep.subr.bf16.mxu1 %v2306_v56 }
  0x3f   :  { %364 = vmatprep.mubr.f32.mxu0 %v2158_v3 }
  0x41   :  { %1194 = vmatpush1.bf16.msra.mxu1 %v2342_v11 }
  0x42   :  { %366 = vmatmul.mubr.f32.gmra.mrb[8].mxu0 %v2332_v8  ;;  %1195 = vmatprep.subr.bf16.mxu1 %v2351_v24 }
  0x43   :  { %371 = vmatprep.mubr.f32.mxu0 %v2158_v3 }
  0x45   :  { %1196 = vmatpush1.bf16.msra.mxu1 %v2385_v57 }
  0x46   :  { %373 = vmatmul.mubr.f32.gmra.mrb[10].mxu0 %v2379_v55  ;;  %1197 = vmatprep.subr.bf16.mxu1 %v2400_v27 }
  0x47   :  { %378 = vmatprep.mubr.f32.mxu0 %v2158_v3 }
  0x49   :  { %1198 = vmatpush1.bf16.msra.mxu1 %v2406_v30 }
  0x4a   :  { %380 = vmatmul.mubr.f32.gmra.mrb[12].mxu0 %v2395_v14  ;;  %1199 = vmatprep.subr.bf16.mxu1 %v2428_v49 }
  0x4b   :  { %385 = vmatprep.mubr.f32.mxu0 %v2158_v3 }
  0x4d   :  { %1200 = vmatpush1.bf16.msra.mxu1 %v2446_v33 }
  0x4e   :  { %387 = vmatmul.mubr.f32.gmra.mrb[14].mxu0 %v2411_v45  ;;  %1201 = vmatprep.subr.bf16.mxu1 %v2452_v34 }
  0x4f   :  { %473 = vmatprep.mubr.f32.mxu0 %v2158_v3 }
  0x51   :  { %1202 = vmatpush1.bf16.msra.mxu1 %v2466_v29 }
  0x52   :  { %476 = vmatmul.mubr.f32.vlgmr.msra.gmra.mrb[0].mxu0 %v2268_v41  ;;  %1203 = vmatprep.subr.bf16.mxu1 %v2472_v53 }
  0x53   :  { %1850 = vmatpush1.bf16.msra.mxu0 %v2222_v20  ;;  %481 = vmatprep.mubr.f32.mxu0 %v2158_v3 }
  0x54   :  { %1852 = vmatprep.subr.bf16.mxu0 %v2226_v22 }
  0x55   :  { %1204 = vmatpush1.bf16.msra.mxu1 %v2483_v1 }
  0x56   :  { %484 = vmatmul.mubr.f32.gmra.mrb[2].mxu0 %v2323_v4  ;;  %1205 = vmatprep.subr.bf16.mxu1 %v2489_v7 }
  0x57   :  { %489 = vmatprep.mubr.f32.mxu0 %v2158_v3  ;;  %1854 = vmatpush1.bf16.msra.mxu0 %v2255_v36 }
  0x58   :  { %1856 = vmatprep.subr.bf16.mxu0 %v2417_v47 }
  0x59   :  { %1206 = vmatpush1.bf16.msra.mxu1 %v2499_v42 }
  0x5a   :  { %492 = vmatmul.mubr.f32.gmra.mrb[4].mxu0 %v2326_v5  ;;  %1207 = vmatprep.subr.bf16.mxu1 %v2505_v43 }
  0x5b   :  { %497 = vmatprep.mubr.f32.mxu0 %v2158_v3 }
  0x5d   :  { %1208 = vmatpush1.bf16.msra.mxu1 %v2512_v39 }
  0x5e   :  { %500 = vmatmul.mubr.f32.gmra.mrb[6].mxu0 %v2329_v6  ;;  %1209 = vmatprep.subr.bf16.mxu1 %v2518_v0 }
  0x5f   :  { %505 = vmatprep.mubr.f32.mxu0 %v2158_v3 }
  0x61   :  { %1210 = vmatpush1.bf16.msra.mxu1 %v2529_v9 }
  0x62   :  { %508 = vmatmul.mubr.f32.gmra.mrb[8].mxu0 %v2354_v25  ;;  %1211 = vmatprep.subr.bf16.mxu1 %v2535_v44 }
  0x63   :  { %513 = vmatprep.mubr.f32.mxu0 %v2158_v3 }
  0x65   :  { %1212 = vmatpush1.bf16.msra.mxu1 %v2545_v21 }
  0x66   :  { %516 = vmatmul.mubr.f32.gmra.mrb[10].mxu0 %v2388_v2  ;;  %1272 = vmatprep.subr.bf16.mxu1 %v2252_v35 }
  0x67   :  { %521 = vmatprep.mubr.f32.mxu0 %v2158_v3 }
  0x6a   :  { %524 = vmatmul.mubr.f32.gmra.mrb[12].mxu0 %v2432_v17 }
  0x6b   :  { %529 = vmatprep.mubr.f32.mxu0 %v2158_v3 }
  0x6e   :  { %532 = vmatmul.mubr.f32.gmra.mrb[14].mxu0 %v2459_v15 }
  0x6f   :  { %610 = vmatprep.mubr.f32.mxu0 %v2158_v3 }
  0x72   :  { %614 = vmatmul.mubr.f32.vlgmr.msra.gmra.mrb[0].mxu0 %v146_v52 }
  0x73   :  { %1858 = vmatpush1.bf16.msra.mxu0 %v2423_v48  ;;  %619 = vmatprep.mubr.f32.mxu0 %v2158_v3 }
  0x74   :  { %1860 = vmatprep.subr.bf16.mxu0 %v2436_v18 }
  0x76   :  { %623 = vmatmul.mubr.f32.gmra.mrb[2].mxu0 %v157_v12 }
  0x77   :  { %628 = vmatprep.mubr.f32.mxu0 %v2158_v3  ;;  %1862 = vmatpush1.bf16.msra.mxu0 %v2438_v32 }
  0x78   :  { %1864 = vmatprep.subr.bf16.mxu0 %v2214_v16 }
  0x7a   :  { %632 = vmatmul.mubr.f32.gmra.mrb[4].mxu0 %v168_v13 }
  0x7b   :  { %637 = vmatprep.mubr.f32.mxu0 %v2158_v3 }
  0x7e   :  { %641 = vmatmul.mubr.f32.gmra.mrb[6].mxu0 %v3002_v23 }
  0x7f   :  { %646 = vmatprep.mubr.f32.mxu0 %v2158_v3 }
  0x82   :  { %650 = vmatmul.mubr.f32.gmra.mrb[8].mxu0 %v190_v54 }
  0x83   :  { %655 = vmatprep.mubr.f32.mxu0 %v2158_v3 }
  0x86   :  { %659 = vmatmul.mubr.f32.gmra.mrb[10].mxu0 %v201_v50 }
  0x87   :  { %664 = vmatprep.mubr.f32.mxu0 %v2158_v3 }
  0x8a   :  { %668 = vmatmul.mubr.f32.gmra.mrb[12].mxu0 %v212_v10 }
  0x8b   :  { %673 = vmatprep.mubr.f32.mxu0 %v2158_v3 }
  0x8e   :  { %677 = vmatmul.mubr.f32.gmra.mrb[14].mxu0 %v223_v63 }
  0x8f   :  { %771 = vmatprep.mubr.f32.mxu0 %v2158_v3 }
  0x92   :  { %773 = vmatmul.mubr.f32.vlgmr.msra.gmra.mrb[0].mxu0 %v2244_v31 }
  0x93   :  { %1866 = vmatpush1.bf16.msra.mxu0 %v2222_v20  ;;  %778 = vmatprep.mubr.f32.mxu0 %v2158_v3 }
  0x94   :  { %1868 = vmatprep.subr.bf16.mxu0 %v2226_v22 }
  0x96   :  { %780 = vmatmul.mubr.f32.gmra.mrb[2].mxu0 %v2308_v58 }
  0x97   :  { %785 = vmatprep.mubr.f32.mxu0 %v2158_v3  ;;  %1870 = vmatpush1.bf16.msra.mxu0 %v2255_v36 }
  0x98   :  { %1438 = vmatprep.subr.bf16.mxu0 %v2252_v35 }
  0x9a   :  { %787 = vmatmul.mubr.f32.gmra.mrb[4].mxu0 %v2310_v59 }
  0x9b   :  { %792 = vmatprep.mubr.f32.mxu0 %v2158_v3 }
  0x9e   :  { %794 = vmatmul.mubr.f32.gmra.mrb[6].mxu0 %v2312_v60 }
  0x9f   :  { %799 = vmatprep.mubr.f32.mxu0 %v2158_v3 }
  0xa2   :  { %801 = vmatmul.mubr.f32.gmra.mrb[8].mxu0 %v2332_v8 }
  0xa3   :  { %806 = vmatprep.mubr.f32.mxu0 %v2158_v3 }
  0xa6   :  { %808 = vmatmul.mubr.f32.gmra.mrb[10].mxu0 %v2379_v55 }
  0xa7   :  { %813 = vmatprep.mubr.f32.mxu0 %v2158_v3 }
  0xaa   :  { %815 = vmatmul.mubr.f32.gmra.mrb[12].mxu0 %v2395_v14 }
  0xab   :  { %820 = vmatprep.mubr.f32.mxu0 %v2158_v3 }
  0xae   :  { %822 = vmatmul.mubr.f32.gmra.mrb[14].mxu0 %v2411_v45 }
  0xaf   :  { %900 = vmatprep.mubr.f32.mxu0 %v2158_v3 }
  0xb2   :  { %902 = vmatmul.mubr.f32.vlgmr.msra.gmra.mrb[0].mxu0 %v2244_v31  ;;  %v37_v31 = vshrl.u32 %v36_v26, 7 }
  0xb3   :  { %907 = vmatprep.mubr.f32.mxu0 %v2158_v3  ;;  %1439 = vmatpush1.bf16.msra.mxu0 %v2265_v40 }
  0xb4   :  { %1440 = vmatprep.subr.bf16.mxu0 %v2286_v46  ;;  %v38_v36 = vsub.s32 0, %v37_v31  ;;  %v42_v38 = vsub.s32 1, %v37_v31 }
  0xb6   :  { %909 = vmatmul.mubr.f32.gmra.mrb[2].mxu0 %v2308_v58  ;;  %v39_v41 = vrot.slane %v34_v37, %v38_v36  ;;  %v43_v52 = vrot.slane %v34_v37, %v42_v38 }
  0xb7   :  { %914 = vmatprep.mubr.f32.mxu0 %v2158_v3  ;;  %1441 = vmatpush1.bf16.msra.mxu0 %v2298_v51 }
  0xb8   :  { %1442 = vmatprep.subr.bf16.mxu0 %v2306_v56 }
  0xba   :  { %916 = vmatmul.mubr.f32.gmra.mrb[4].mxu0 %v2310_v59 }
  0xbb   :  { %921 = vmatprep.mubr.f32.mxu0 %v2158_v3  ;;  %1443 = vmatpush1.bf16.msra.mxu0 %v2342_v11 }
  0xbc   :  { %1444 = vmatprep.subr.bf16.mxu0 %v2351_v24 }
  0xbe   :  { %923 = vmatmul.mubr.f32.gmra.mrb[6].mxu0 %v2312_v60 }
  0xbf   :  { %928 = vmatprep.mubr.f32.mxu0 %v2158_v3  ;;  %1445 = vmatpush1.bf16.msra.mxu0 %v2385_v57 }
  0xc0   :  { %1446 = vmatprep.subr.bf16.mxu0 %v2400_v27 }
  0xc2   :  { %930 = vmatmul.mubr.f32.gmra.mrb[8].mxu0 %v2332_v8 }
  0xc3   :  { %935 = vmatprep.mubr.f32.mxu0 %v2158_v3  ;;  %1447 = vmatpush1.bf16.msra.mxu0 %v2406_v30 }
  0xc4   :  { %1448 = vmatprep.subr.bf16.mxu0 %v2428_v49 }
  0xc6   :  { %937 = vmatmul.mubr.f32.gmra.mrb[10].mxu0 %v2379_v55 }
  0xc7   :  { %942 = vmatprep.mubr.f32.mxu0 %v2158_v3  ;;  %1449 = vmatpush1.bf16.msra.mxu0 %v2446_v33 }
  0xc8   :  { %1450 = vmatprep.subr.bf16.mxu0 %v2452_v34 }
  0xca   :  { %944 = vmatmul.mubr.f32.gmra.mrb[12].mxu0 %v2395_v14 }
  0xcb   :  { %949 = vmatprep.mubr.f32.mxu0 %v2158_v3  ;;  %1451 = vmatpush1.bf16.msra.mxu0 %v2466_v29 }
  0xcc   :  { %1452 = vmatprep.subr.bf16.mxu0 %v2472_v53 }
  0xce   :  { %951 = vmatmul.mubr.f32.gmra.mrb[14].mxu0 %v2411_v45 }
  0xcf   :  { %1453 = vmatpush1.bf16.msra.mxu0 %v2483_v1 }
  0xd0   :  { %1454 = vmatprep.subr.bf16.mxu0 %v2489_v7 }
  0xd3   :  { %1455 = vmatpush1.bf16.msra.mxu0 %v2499_v42 }
  0xd4   :  { %1456 = vmatprep.subr.bf16.mxu0 %v2505_v43 }
  0xd7   :  { %1457 = vmatpush1.bf16.msra.mxu0 %v2512_v39 }
  0xd8   :  { %1458 = vmatprep.subr.bf16.mxu0 %v2518_v0 }
  0xdb   :  { %1459 = vmatpush1.bf16.msra.mxu0 %v2529_v9 }
  0xdc   :  { %1460 = vmatprep.subr.bf16.mxu0 %v2535_v44 }
  0xdf   :  { %1461 = vmatpush1.bf16.msra.mxu0 %v2545_v21 }
  0xe0   :  { %1604 = vmatprep.subr.bf16.mxu0 %v2252_v35 }
 0x10b   :  { %v1140_v3 = vpop.f32.mrb[0].mxu1 }
 0x10c   :  { %v1142_v16 = vpop.f32.mrb[1].mxu1 }
 0x10d   :  { %v1144_v20 = vpop.f32.mrb[2].mxu1 }
 0x10e   :  { %v1145_v22 = vpop.f32.mrb[3].mxu1 }
 0x185   :  { %v903_v58 = vpop.f32.mrb[0].mxu0 }
 0x186   :  { %v1871_v59 = vadd.f32 %v903_v58, %v39_v41  ;;  %v905_v60 = vpop.f32.mrb[1].mxu0 }
 0x187   :  { %v1872_v4 = vadd.f32 %v905_v60, %v43_v52 }
 0x188   :  { %v1147_v5 = vadd.f32 %v1871_v59, %v1140_v3 }
 0x189   :  { %v1148_v6 = vadd.f32 %v1872_v4, %v1142_v16  ;;  %v910_v8 = vpop.f32.mrb[2].mxu0 }
 0x18a   :  { %v1792_v12 = vmul.f32 -1.442695, %v1147_v5  ;;  %v2699_v13 = vadd.f32 %v910_v8, %v39_v41  ;;  %v912_v14 = vpop.f32.mrb[3].mxu0  ;;  %1155 = vrot.lane.b32.xlu0 %v1147_v5, %s2160_s14 }
 0x18b   :  { %v2702_v25 = vadd.f32 %v912_v14, %v43_v52 }
 0x18c   :  { %2006 = vpow2.f32 %v1792_v12 }
 0x18d   :  { %v917_v54 = vpop.f32.mrb[4].mxu0  ;;  %2008 = vtanh.f32 %v1148_v6 }
 0x18e   :  { %v2704_v55 = vadd.f32 %v917_v54, %v39_v41  ;;  %v919_v2 = vpop.f32.mrb[5].mxu0  ;;  %1164 = vrot.lane.b32.xlu0 %v1148_v6, %s2160_s14 }
 0x18f   :  { %v2707_v45 = vadd.f32 %v919_v2, %v43_v52 }
 0x191   :  { %v924_v47 = vpop.f32.mrb[6].mxu0 }
 0x192   :  { %v2709_v48 = vadd.f32 %v924_v47, %v39_v41  ;;  %v926_v50 = vpop.f32.mrb[7].mxu0 }
 0x193   :  { %v2711_v17 = vadd.f32 %v926_v50, %v43_v52 }
 0x195   :  { %v931_v18 = vpop.f32.mrb[8].mxu0 }
 0x196   :  { %v2007_v32 = vpop.eup %2006  ;;  %v2713_v10 = vadd.f32 %v931_v18, %v39_v41  ;;  %v933_v15 = vpop.f32.mrb[9].mxu0 }
 0x197   :  { %v1152_v63 = vadd.f32 1.0, %v2007_v32  ;;  %v2715_v61 = vadd.f32 %v933_v15, %v43_v52  ;;  %v2009_v31 = vpop.eup %2008 }
 0x199   :  { %2010 = vrcp.f32 %v1152_v63  ;;  %v938_v62 = vpop.f32.mrb[10].mxu0 }
 0x19a   :  { %v2717_v28 = vadd.f32 %v938_v62, %v39_v41  ;;  %v940_v19 = vpop.f32.mrb[11].mxu0 }
 0x19b   :  { %v2719_v23 = vadd.f32 %v940_v19, %v43_v52 }
 0x19d   :  { %v945_v3 = vpop.f32.mrb[12].mxu0 }
 0x19e   :  { %v2721_v16 = vadd.f32 %v945_v3, %v39_v41  ;;  %v947_v20 = vpop.f32.mrb[13].mxu0 }
 0x19f   :  { %v2723_v22 = vadd.f32 %v947_v20, %v43_v52 }
 0x1a1   :  { %v952_v26 = vpop.f32.mrb[14].mxu0 }
 0x1a2   :  { %v2725_v36 = vadd.f32 %v952_v26, %v39_v41  ;;  %v954_v37 = vpop.f32.mrb[15].mxu0 }
 0x1a3   :  { %v2011_v38 = vpop.eup %2010  ;;  %v2727_v58 = vadd.f32 %v954_v37, %v43_v52 }
 0x1a4   :  { %v1173_v59 = vmul.f32 %v2011_v38, %v2009_v31 }
 0x1fc   :  { %v1156_v60 = vpop.permute.xlu0 %1155 }
 0x1fd   :  { %v1793_v4 = vmul.f32 -1.442695, %v1156_v60 }
 0x1ff   :  { %2012 = vpow2.f32 %v1793_v4 }
 0x200   :  { %v1165_v5 = vpop.permute.xlu0 %1164 }
 0x201   :  { %v1794_v6 = vmul.f32 -1.442695, %v1165_v5 }
 0x203   :  { %2014 = vpow2.f32 %v1794_v6 }
 0x209   :  { %v2013_v8 = vpop.eup %2012 }
 0x20a   :  { %v1160_v12 = vadd.f32 1.0, %v2013_v8 }
 0x20c   :  { %2016 = vrcp.f32 %v1160_v12 }
 0x20d   :  { %v2015_v14 = vpop.eup %2014 }
 0x20e   :  { %v1169_v2 = vadd.f32 1.0, %v2015_v14 }
 0x210   :  { %2018 = vrcp.f32 %v1169_v2 }
 0x216   :  { %v2017_v54 = vpop.eup %2016 }
 0x217   :  { %v1172_v47 = vmul.f32 0.0, %v2017_v54 }
 0x219   :  { %v2729_v41 = vadd.f32 %v1173_v59, %v1172_v47 }
 0x21a   :  { %v2019_v52 = vpop.eup %2018 }
 0x21b   :  { %2020 = vtanh.f32 %v2729_v41 }
 0x225   :  { %v2021_v50 = vpop.eup %2020 }
 0x226   :  { %v1176_v18 = vmul.f32 %v2021_v50, %v2019_v52 }
 0x228   :  { %v1177_v32 = vpack.c.bf16 %v1176_v18, %v1176_v18 }
 0x22a   :  { %1795 = vmatprep.mubr.msk.bf16.mxu1 %vm1102_vm1, %v1177_v32  ;;  %v1178_v15 = vunpack.c.l.bf16 %v1177_v32 }
 0x22c   :  { %v1179_v63 = vsub.f32 %v1176_v18, %v1178_v15 }
 0x22e   :  { %1181 = vrot.lane.b32.xlu1 %v1179_v63, %s2160_s14 }
 0x2a0   :  { %v1182_v62 = vpop.permute.xlu1 %1181 }
 0x2a1   :  { %v1184_v19 = vsel %vm1102_vm1, %v1176_v18, %v1182_v62 }
 0x2a2   :  { %v1185_v3 = vpack.c.bf16 %v1184_v19, %v1184_v19 }
 0x2a4   :  { %1222 = vmatmul.mubr.bf16.vlgmr.msra.gmra.mrb[4].mxu1 %v1185_v3 }
 0x2a5   :  { %1273 = vmatpush1.bf16.msra.mxu1 %v2265_v40 }
 0x2a6   :  { %1274 = vmatprep.subr.bf16.mxu1 %v2286_v46 }
 0x2a9   :  { %1275 = vmatpush1.bf16.msra.mxu1 %v2298_v51 }
 0x2aa   :  { %1276 = vmatprep.subr.bf16.mxu1 %v2306_v56 }
 0x2ad   :  { %1277 = vmatpush1.bf16.msra.mxu1 %v2342_v11 }
 0x2ae   :  { %1278 = vmatprep.subr.bf16.mxu1 %v2351_v24 }
 0x2b1   :  { %1279 = vmatpush1.bf16.msra.mxu1 %v2385_v57 }
 0x2b2   :  { %1280 = vmatprep.subr.bf16.mxu1 %v2400_v27 }
 0x2b5   :  { %1281 = vmatpush1.bf16.msra.mxu1 %v2406_v30 }
 0x2b6   :  { %1282 = vmatprep.subr.bf16.mxu1 %v2428_v49 }
 0x2b9   :  { %1283 = vmatpush1.bf16.msra.mxu1 %v2446_v33 }
 0x2ba   :  { %1284 = vmatprep.subr.bf16.mxu1 %v2452_v34 }
 0x2bd   :  { %1285 = vmatpush1.bf16.msra.mxu1 %v2466_v29 }
 0x2be   :  { %1286 = vmatprep.subr.bf16.mxu1 %v2472_v53 }
 0x2c1   :  { %1287 = vmatpush1.bf16.msra.mxu1 %v2483_v1 }
 0x2c2   :  { %1288 = vmatprep.subr.bf16.mxu1 %v2489_v7 }
 0x2c5   :  { %1289 = vmatpush1.bf16.msra.mxu1 %v2499_v42 }
 0x2c6   :  { %1290 = vmatprep.subr.bf16.mxu1 %v2505_v43 }
 0x2c9   :  { %1291 = vmatpush1.bf16.msra.mxu1 %v2512_v39 }
 0x2ca   :  { %1292 = vmatprep.subr.bf16.mxu1 %v2518_v0 }
 0x2cd   :  { %1293 = vmatpush1.bf16.msra.mxu1 %v2529_v9 }
 0x2ce   :  { %1294 = vmatprep.subr.bf16.mxu1 %v2535_v44 }
 0x2d1   :  { %1295 = vmatpush1.bf16.msra.mxu1 %v2545_v21 }
 0x2d2   :  { %1355 = vmatprep.subr.bf16.mxu1 %v2252_v35 }
 0x377   :  { %v1223_v20 = vpop.f32.mrb[4].mxu1 }
 0x378   :  { %v1230_v26 = vadd.f32 %v2699_v13, %v1223_v20  ;;  %v1225_v31 = vpop.f32.mrb[5].mxu1 }
 0x379   :  { %v1231_v37 = vadd.f32 %v2702_v25, %v1225_v31  ;;  %v1227_v38 = vpop.f32.mrb[6].mxu1 }
 0x37a   :  { %v1796_v59 = vmul.f32 -1.442695, %v1230_v26  ;;  %1238 = vrot.lane.b32.xlu1 %v1230_v26, %s2160_s14  ;;  %v1228_v60 = vpop.f32.mrb[7].mxu1 }
 0x37b   :  { %1247 = vrot.lane.b32.xlu0 %v1231_v37, %s2160_s14 }
 0x37c   :  { %2022 = vpow2.f32 %v1796_v59 }
 0x37d   :  { %2024 = vtanh.f32 %v1231_v37 }
 0x386   :  { %v2023_v4 = vpop.eup %2022 }
 0x387   :  { %v1235_v5 = vadd.f32 1.0, %v2023_v4  ;;  %v2025_v6 = vpop.eup %2024 }
 0x389   :  { %2026 = vrcp.f32 %v1235_v5 }
 0x393   :  { %v2027_v8 = vpop.eup %2026 }
 0x394   :  { %v1256_v12 = vmul.f32 %v2027_v8, %v2025_v6 }
 0x3ec   :  { %v1239_v14 = vpop.permute.xlu1 %1238 }
 0x3ed   :  { %v1797_v13 = vmul.f32 -1.442695, %v1239_v14  ;;  %v1248_v54 = vpop.permute.xlu0 %1247 }
 0x3ee   :  { %v1798_v25 = vmul.f32 -1.442695, %v1248_v54 }
 0x3ef   :  { %2028 = vpow2.f32 %v1797_v13 }
 0x3f0   :  { %2030 = vpow2.f32 %v1798_v25 }
 0x3f9   :  { %v2029_v2 = vpop.eup %2028 }
 0x3fa   :  { %v1243_v47 = vadd.f32 1.0, %v2029_v2  ;;  %v2031_v52 = vpop.eup %2030 }
 0x3fb   :  { %v1252_v18 = vadd.f32 1.0, %v2031_v52 }
 0x3fc   :  { %2032 = vrcp.f32 %v1243_v47 }
 0x3fd   :  { %2034 = vrcp.f32 %v1252_v18 }
 0x406   :  { %v2033_v50 = vpop.eup %2032 }
 0x407   :  { %v1255_v32 = vmul.f32 %v2033_v50, %v2729_v41  ;;  %v2035_v63 = vpop.eup %2034 }
 0x409   :  { %v2764_v15 = vadd.f32 %v1256_v12, %v1255_v32 }
 0x40b   :  { %2036 = vtanh.f32 %v2764_v15 }
 0x415   :  { %v2037_v62 = vpop.eup %2036 }
 0x416   :  { %v1259_v19 = vmul.f32 %v2037_v62, %v2035_v63 }
 0x418   :  { %v1260_v3 = vpack.c.bf16 %v1259_v19, %v1259_v19 }
 0x41a   :  { %1799 = vmatprep.mubr.msk.bf16.mxu1 %vm1102_vm1, %v1260_v3  ;;  %v1261_v20 = vunpack.c.l.bf16 %v1260_v3 }
 0x41c   :  { %v1262_v26 = vsub.f32 %v1259_v19, %v1261_v20 }
 0x41e   :  { %1264 = vrot.lane.b32.xlu1 %v1262_v26, %s2160_s14 }
 0x490   :  { %v1265_v31 = vpop.permute.xlu1 %1264 }
 0x491   :  { %v1267_v37 = vsel %vm1102_vm1, %v1259_v19, %v1265_v31 }
 0x492   :  { %v1268_v38 = vpack.c.bf16 %v1267_v37, %v1267_v37  ;;  %v2814_v37 = vld [vmem:[%s2998_s3 + $0x14] ss:$8 sps:$4 sm:$0xff]  }
 0x494   :  { %1305 = vmatmul.mubr.bf16.vlgmr.msra.gmra.mrb[8].mxu1 %v1268_v38  ;;  %v2820_v38 = vld [vmem:[%s2998_s3 + $0x10] ss:$8 sps:$4 sm:$0xff]  }
 0x495   :  { %1356 = vmatpush1.bf16.msra.mxu1 %v2265_v40 }
 0x496   :  { %1357 = vmatprep.subr.bf16.mxu1 %v2286_v46 }
 0x499   :  { %1358 = vmatpush1.bf16.msra.mxu1 %v2298_v51 }
 0x49a   :  { %1359 = vmatprep.subr.bf16.mxu1 %v2306_v56 }
 0x49d   :  { %1360 = vmatpush1.bf16.msra.mxu1 %v2342_v11 }
 0x49e   :  { %1361 = vmatprep.subr.bf16.mxu1 %v2351_v24 }
 0x4a1   :  { %1362 = vmatpush1.bf16.msra.mxu1 %v2385_v57 }
 0x4a2   :  { %1363 = vmatprep.subr.bf16.mxu1 %v2400_v27 }
 0x4a5   :  { %1364 = vmatpush1.bf16.msra.mxu1 %v2406_v30 }
 0x4a6   :  { %1365 = vmatprep.subr.bf16.mxu1 %v2428_v49 }
 0x4a9   :  { %1366 = vmatpush1.bf16.msra.mxu1 %v2446_v33 }
 0x4aa   :  { %1367 = vmatprep.subr.bf16.mxu1 %v2452_v34 }
 0x4ad   :  { %1368 = vmatpush1.bf16.msra.mxu1 %v2466_v29 }
 0x4ae   :  { %1369 = vmatprep.subr.bf16.mxu1 %v2472_v53 }
 0x4b1   :  { %1370 = vmatpush1.bf16.msra.mxu1 %v2483_v1 }
 0x4b2   :  { %1371 = vmatprep.subr.bf16.mxu1 %v2489_v7 }
 0x4b5   :  { %1372 = vmatpush1.bf16.msra.mxu1 %v2499_v42 }
 0x4b6   :  { %1373 = vmatprep.subr.bf16.mxu1 %v2505_v43 }
 0x4b9   :  { %1374 = vmatpush1.bf16.msra.mxu1 %v2512_v39 }
 0x4ba   :  { %1375 = vmatprep.subr.bf16.mxu1 %v2518_v0 }
 0x4bd   :  { %1376 = vmatpush1.bf16.msra.mxu1 %v2529_v9 }
 0x4be   :  { %1377 = vmatprep.subr.bf16.mxu1 %v2535_v44 }
 0x4c1   :  { %1378 = vmatpush1.bf16.msra.mxu1 %v2545_v21 }
 0x4c2   :  { %1521 = vmatprep.subr.bf16.mxu1 %v2252_v35 }
 0x567   :  { %v1306_v40 = vpop.f32.mrb[8].mxu1 }
 0x568   :  { %v1313_v46 = vadd.f32 %v2704_v55, %v1306_v40  ;;  %v1308_v51 = vpop.f32.mrb[9].mxu1  ;;  %v2826_v40 = vld [vmem:[%s2998_s3 + $0x24] ss:$8 sps:$4 sm:$0xff]  }
 0x569   :  { %v1314_v56 = vadd.f32 %v2707_v45, %v1308_v51  ;;  %v1310_v41 = vpop.f32.mrb[10].mxu1 }
 0x56a   :  { %v1800_v59 = vmul.f32 -1.442695, %v1313_v46  ;;  %1321 = vrot.lane.b32.xlu0 %v1313_v46, %s2160_s14  ;;  %v1311_v60 = vpop.f32.mrb[11].mxu1 }
 0x56b   :  { %1330 = vrot.lane.b32.xlu1 %v1314_v56, %s2160_s14 }
 0x56c   :  { %2038 = vpow2.f32 %v1800_v59 }
 0x56d   :  { %2040 = vtanh.f32 %v1314_v56 }
 0x576   :  { %v2039_v4 = vpop.eup %2038 }
 0x577   :  { %v1318_v5 = vadd.f32 1.0, %v2039_v4  ;;  %v2041_v6 = vpop.eup %2040 }
 0x579   :  { %2042 = vrcp.f32 %v1318_v5 }
 0x583   :  { %v2043_v35 = vpop.eup %2042 }
 0x584   :  { %v1339_v8 = vmul.f32 %v2043_v35, %v2041_v6 }
 0x5dc   :  { %v1322_v12 = vpop.permute.xlu0 %1321 }
 0x5dd   :  { %v1801_v55 = vmul.f32 -1.442695, %v1322_v12  ;;  %v1331_v14 = vpop.permute.xlu1 %1330 }
 0x5de   :  { %v1802_v45 = vmul.f32 -1.442695, %v1331_v14 }
 0x5df   :  { %2044 = vpow2.f32 %v1801_v55 }
 0x5e0   :  { %2046 = vpow2.f32 %v1802_v45 }
 0x5e9   :  { %v2045_v13 = vpop.eup %2044 }
 0x5ea   :  { %v1326_v54 = vadd.f32 1.0, %v2045_v13  ;;  %v2047_v25 = vpop.eup %2046 }
 0x5eb   :  { %v1335_v47 = vadd.f32 1.0, %v2047_v25 }
 0x5ec   :  { %2048 = vrcp.f32 %v1326_v54 }
 0x5ed   :  { %2050 = vrcp.f32 %v1335_v47 }
 0x5f6   :  { %v2049_v2 = vpop.eup %2048 }
 0x5f7   :  { %v1338_v52 = vmul.f32 %v2049_v2, %v2764_v15  ;;  %v2051_v18 = vpop.eup %2050  ;;  %v2808_v15 = vld [vmem:[%s2998_s3] ss:$8 sps:$4 sm:$0xff]  }
 0x5f9   :  { %v2799_v50 = vadd.f32 %v1339_v8, %v1338_v52 }
 0x5fb   :  { %2052 = vtanh.f32 %v2799_v50 }
 0x605   :  { %v2053_v32 = vpop.eup %2052 }
 0x606   :  { %v1342_v63 = vmul.f32 %v2053_v32, %v2051_v18 }
 0x608   :  { %v1343_v62 = vpack.c.bf16 %v1342_v63, %v1342_v63 }
 0x60a   :  { %1803 = vmatprep.mubr.msk.bf16.mxu1 %vm1102_vm1, %v1343_v62  ;;  %v1344_v19 = vunpack.c.l.bf16 %v1343_v62 }
 0x60c   :  { %v1345_v3 = vsub.f32 %v1342_v63, %v1344_v19 }
 0x60e   :  { %1347 = vrot.lane.b32.xlu0 %v1345_v3, %s2160_s14  ;;  %v2875_v3 = vld [vmem:[%s2998_s3 + $0x34] ss:$8 sps:$4 sm:$0xff]  }
 0x680   :  { %v1348_v20 = vpop.permute.xlu0 %1347 }
 0x681   :  { %v1350_v26 = vsel %vm1102_vm1, %v1342_v63, %v1348_v20  ;;  %v2881_v20 = vld [vmem:[%s2998_s3 + $0x30] ss:$8 sps:$4 sm:$0xff]  }
 0x682   :  { %v1351_v31 = vpack.c.bf16 %v1350_v26, %v1350_v26  ;;  %v2887_v26 = vld [vmem:[%s2998_s3 + $0x44] ss:$8 sps:$4 sm:$0xff]  }
 0x684   :  { %1388 = vmatmul.mubr.bf16.vlgmr.msra.gmra.mrb[12].mxu1 %v1351_v31  ;;  %v2893_v31 = vld [vmem:[%s2998_s3 + $0x40] ss:$8 sps:$4 sm:$0xff]  }
 0x685   :  { %1522 = vmatpush1.bf16.msra.mxu1 %v2808_v15 }
 0x686   :  { %1523 = vmatprep.subr.bf16.mxu1 %v2814_v37 }
 0x689   :  { %1524 = vmatpush1.bf16.msra.mxu1 %v2820_v38 }
 0x68a   :  { %1525 = vmatprep.subr.bf16.mxu1 %v2826_v40 }
 0x68d   :  { %1526 = vmatpush1.bf16.msra.mxu1 %v2342_v11  ;;  %v2138_v11 = vld [vmem:[%s2998_s3 + $0x4] ss:$8 sps:$4 sm:$0xff]  }
 0x68e   :  { %1527 = vmatprep.subr.bf16.mxu1 %v2351_v24 }
 0x691   :  { %1528 = vmatpush1.bf16.msra.mxu1 %v2385_v57 }
 0x692   :  { %1529 = vmatprep.subr.bf16.mxu1 %v2400_v27 }
 0x695   :  { %1530 = vmatpush1.bf16.msra.mxu1 %v2406_v30 }
 0x696   :  { %1531 = vmatprep.subr.bf16.mxu1 %v2428_v49 }
 0x699   :  { %1532 = vmatpush1.bf16.msra.mxu1 %v2446_v33 }
 0x69a   :  { %1533 = vmatprep.subr.bf16.mxu1 %v2452_v34 }
 0x69d   :  { %1534 = vmatpush1.bf16.msra.mxu1 %v2466_v29 }
 0x69e   :  { %1535 = vmatprep.subr.bf16.mxu1 %v2472_v53 }
 0x6a1   :  { %1536 = vmatpush1.bf16.msra.mxu1 %v2483_v1 }
 0x6a2   :  { %1537 = vmatprep.subr.bf16.mxu1 %v2489_v7 }
 0x6a5   :  { %1538 = vmatpush1.bf16.msra.mxu1 %v2499_v42 }
 0x6a6   :  { %1539 = vmatprep.subr.bf16.mxu1 %v2505_v43 }
 0x6a9   :  { %1540 = vmatpush1.bf16.msra.mxu1 %v2512_v39 }
 0x6aa   :  { %1541 = vmatprep.subr.bf16.mxu1 %v2518_v0 }
 0x6ad   :  { %1542 = vmatpush1.bf16.msra.mxu1 %v2529_v9 }
 0x6ae   :  { %1543 = vmatprep.subr.bf16.mxu1 %v2535_v44 }
 0x6b1   :  { %1544 = vmatpush1.bf16.msra.mxu1 %v2545_v21 }
 0x6b2   :  { %1687 = vmatprep.subr.bf16.mxu1 %v2138_v11 }
 0x757   :  { %v1389_v24 = vpop.f32.mrb[12].mxu1 }
 0x758   :  { %v1396_v57 = vadd.f32 %v2709_v48, %v1389_v24  ;;  %v1391_v27 = vpop.f32.mrb[13].mxu1 }
 0x759   :  { %v1397_v30 = vadd.f32 %v2711_v17, %v1391_v27  ;;  %v1393_v46 = vpop.f32.mrb[14].mxu1 }
 0x75a   :  { %v1804_v51 = vmul.f32 -1.442695, %v1396_v57  ;;  %1404 = vrot.lane.b32.xlu1 %v1396_v57, %s2160_s14  ;;  %v1394_v56 = vpop.f32.mrb[15].mxu1 }
 0x75b   :  { %1413 = vrot.lane.b32.xlu0 %v1397_v30, %s2160_s14 }
 0x75c   :  { %2054 = vpow2.f32 %v1804_v51 }
 0x75d   :  { %2056 = vtanh.f32 %v1397_v30 }
 0x766   :  { %v2055_v41 = vpop.eup %2054 }
 0x767   :  { %v1401_v59 = vadd.f32 1.0, %v2055_v41  ;;  %v2057_v60 = vpop.eup %2056 }
 0x769   :  { %2058 = vrcp.f32 %v1401_v59 }
 0x773   :  { %v2059_v4 = vpop.eup %2058 }
 0x774   :  { %v1422_v5 = vmul.f32 %v2059_v4, %v2057_v60 }
 0x7cc   :  { %v1405_v6 = vpop.permute.xlu1 %1404 }
 0x7cd   :  { %v1805_v48 = vmul.f32 -1.442695, %v1405_v6  ;;  %v1414_v35 = vpop.permute.xlu0 %1413 }
 0x7ce   :  { %v1806_v17 = vmul.f32 -1.442695, %v1414_v35 }
 0x7cf   :  { %2060 = vpow2.f32 %v1805_v48 }
 0x7d0   :  { %2062 = vpow2.f32 %v1806_v17  ;;  %v2148_v17 = vld [vmem:[%s2998_s3 + $0x74] ss:$8 sps:$4 sm:$0xff]  }
 0x7d9   :  { %v2061_v8 = vpop.eup %2060 }
 0x7da   :  { %v1409_v12 = vadd.f32 1.0, %v2061_v8  ;;  %v2063_v55 = vpop.eup %2062  ;;  %v2149_v8 = vld [vmem:[%s2998_s3 + $0x70] ss:$8 sps:$4 sm:$0xff]  }
 0x7db   :  { %v1418_v45 = vadd.f32 1.0, %v2063_v55  ;;  %v2151_v55 = vld [vmem:[%s2998_s3 + $0x80] ss:$8 sps:$4 sm:$0xff]  }
 0x7dc   :  { %2064 = vrcp.f32 %v1409_v12  ;;  %v2150_v12 = vld [vmem:[%s2998_s3 + $0x84] ss:$8 sps:$4 sm:$0xff]  }
 0x7dd   :  { %2066 = vrcp.f32 %v1418_v45  ;;  %v2153_v45 = vld [vmem:[%s2998_s3 + $0x90] ss:$8 sps:$4 sm:$0xff]  }
 0x7e6   :  { %v2065_v14 = vpop.eup %2064 }
 0x7e7   :  { %v1421_v13 = vmul.f32 %v2065_v14, %v2799_v50  ;;  %v2067_v25 = vpop.eup %2066  ;;  %v2869_v50 = vld [vmem:[%s2998_s3 + $0x20] ss:$8 sps:$4 sm:$0xff]   ;;  %v2152_v14 = vld [vmem:[%s2998_s3 + $0x94] ss:$8 sps:$4 sm:$0xff]  }
 0x7e9   :  { %v2856_v54 = vadd.f32 %v1422_v5, %v1421_v13  ;;  %v2154_v13 = vld [vmem:[%s2998_s3 + $0xa4] ss:$8 sps:$4 sm:$0xff]  }
 0x7eb   :  { %2068 = vtanh.f32 %v2856_v54 }
 0x7f5   :  { %v2069_v2 = vpop.eup %2068 }
 0x7f6   :  { %v1425_v47 = vmul.f32 %v2069_v2, %v2067_v25  ;;  %v2156_v25 = vld [vmem:[%s2998_s3 + $0xb4] ss:$8 sps:$4 sm:$0xff]   ;;  %v2157_v2 = vld [vmem:[%s2998_s3 + $0xb0] ss:$8 sps:$4 sm:$0xff]  }
 0x7f8   :  { %v1426_v52 = vpack.c.bf16 %v1425_v47, %v1425_v47 }
 0x7fa   :  { %1807 = vmatprep.mubr.msk.bf16.mxu0 %vm1102_vm1, %v1426_v52  ;;  %v1427_v18 = vunpack.c.l.bf16 %v1426_v52 }
 0x7fc   :  { %v1428_v32 = vsub.f32 %v1425_v47, %v1427_v18 }
 0x7fe   :  { %1430 = vrot.lane.b32.xlu1 %v1428_v32, %s2160_s14 }
 0x870   :  { %v1431_v63 = vpop.permute.xlu1 %1430 }
 0x871   :  { %v1433_v62 = vsel %vm1102_vm1, %v1425_v47, %v1431_v63 }
 0x872   :  { %v1434_v19 = vpack.c.bf16 %v1433_v62, %v1433_v62 }
 0x874   :  { %1471 = vmatmul.mubr.bf16.vlgmr.msra.gmra.mrb[16].mxu0 %v1434_v19 }
 0x875   :  { %1605 = vmatpush1.bf16.msra.mxu0 %v2808_v15 }
 0x876   :  { %1606 = vmatprep.subr.bf16.mxu0 %v2814_v37 }
 0x879   :  { %1607 = vmatpush1.bf16.msra.mxu0 %v2820_v38 }
 0x87a   :  { %1608 = vmatprep.subr.bf16.mxu0 %v2826_v40 }
 0x87d   :  { %1609 = vmatpush1.bf16.msra.mxu0 %v2869_v50 }
 0x87e   :  { %1610 = vmatprep.subr.bf16.mxu0 %v2875_v3 }
 0x881   :  { %1611 = vmatpush1.bf16.msra.mxu0 %v2881_v20 }
 0x882   :  { %1612 = vmatprep.subr.bf16.mxu0 %v2887_v26 }
 0x885   :  { %1613 = vmatpush1.bf16.msra.mxu0 %v2893_v31 }
 0x886   :  { %1614 = vmatprep.subr.bf16.mxu0 %v2428_v49 }
 0x889   :  { %1615 = vmatpush1.bf16.msra.mxu0 %v2446_v33 }
 0x88a   :  { %1616 = vmatprep.subr.bf16.mxu0 %v2452_v34 }
 0x88d   :  { %1617 = vmatpush1.bf16.msra.mxu0 %v2466_v29 }
 0x88e   :  { %1618 = vmatprep.subr.bf16.mxu0 %v2472_v53 }
 0x891   :  { %1619 = vmatpush1.bf16.msra.mxu0 %v2483_v1 }
 0x892   :  { %1620 = vmatprep.subr.bf16.mxu0 %v2489_v7 }
 0x895   :  { %1621 = vmatpush1.bf16.msra.mxu0 %v2499_v42 }
 0x896   :  { %1622 = vmatprep.subr.bf16.mxu0 %v2505_v43 }
 0x899   :  { %1623 = vmatpush1.bf16.msra.mxu0 %v2512_v39 }
 0x89a   :  { %1624 = vmatprep.subr.bf16.mxu0 %v2518_v0 }
 0x89d   :  { %1625 = vmatpush1.bf16.msra.mxu0 %v2529_v9 }
 0x89e   :  { %1626 = vmatprep.subr.bf16.mxu0 %v2535_v44 }
 0x8a1   :  { %1627 = vmatpush1.bf16.msra.mxu0 %v2545_v21 }
 0x947   :  { %v1472_v49 = vpop.f32.mrb[16].mxu0 }
 0x948   :  { %v1479_v33 = vadd.f32 %v2713_v10, %v1472_v49  ;;  %v1474_v34 = vpop.f32.mrb[17].mxu0 }
 0x949   :  { %v1480_v29 = vadd.f32 %v2715_v61, %v1474_v34  ;;  %v1476_v53 = vpop.f32.mrb[18].mxu0 }
 0x94a   :  { %v1808_v1 = vmul.f32 -1.442695, %v1479_v33  ;;  %1487 = vrot.lane.b32.xlu0 %v1479_v33, %s2160_s14  ;;  %v1477_v7 = vpop.f32.mrb[19].mxu0 }
 0x94b   :  { %1496 = vrot.lane.b32.xlu1 %v1480_v29, %s2160_s14 }
 0x94c   :  { %2070 = vpow2.f32 %v1808_v1 }
 0x94d   :  { %2072 = vtanh.f32 %v1480_v29 }
 0x956   :  { %v2071_v42 = vpop.eup %2070 }
 0x957   :  { %v1484_v43 = vadd.f32 1.0, %v2071_v42  ;;  %v2073_v39 = vpop.eup %2072 }
 0x959   :  { %2074 = vrcp.f32 %v1484_v43 }
 0x963   :  { %v2075_v0 = vpop.eup %2074 }
 0x964   :  { %v1505_v9 = vmul.f32 %v2075_v0, %v2073_v39 }
 0x9bc   :  { %v1488_v44 = vpop.permute.xlu0 %1487 }
 0x9bd   :  { %v1809_v21 = vmul.f32 -1.442695, %v1488_v44  ;;  %v1497_v10 = vpop.permute.xlu1 %1496 }
 0x9be   :  { %v1810_v61 = vmul.f32 -1.442695, %v1497_v10 }
 0x9bf   :  { %2076 = vpow2.f32 %v1809_v21 }
 0x9c0   :  { %2078 = vpow2.f32 %v1810_v61 }
 0x9c9   :  { %v2077_v11 = vpop.eup %2076 }
 0x9ca   :  { %v1492_v24 = vadd.f32 1.0, %v2077_v11  ;;  %v2079_v57 = vpop.eup %2078 }
 0x9cb   :  { %v1501_v30 = vadd.f32 1.0, %v2079_v57 }
 0x9cc   :  { %2080 = vrcp.f32 %v1492_v24 }
 0x9cd   :  { %2082 = vrcp.f32 %v1501_v30 }
 0x9d6   :  { %v2081_v27 = vpop.eup %2080 }
 0x9d7   :  { %v1504_v46 = vmul.f32 %v2081_v27, %v2856_v54  ;;  %v2083_v56 = vpop.eup %2082  ;;  %v2155_v54 = vld [vmem:[%s2998_s3 + $0xa0] ss:$8 sps:$4 sm:$0xff]  }
 0x9d9   :  { %v2915_v51 = vadd.f32 %v1505_v9, %v1504_v46 }
 0x9db   :  { %2084 = vtanh.f32 %v2915_v51 }
 0x9e5   :  { %v2085_v41 = vpop.eup %2084 }
 0x9e6   :  { %v1508_v59 = vmul.f32 %v2085_v41, %v2083_v56 }
 0x9e8   :  { %v1509_v60 = vpack.c.bf16 %v1508_v59, %v1508_v59 }
 0x9ea   :  { %1811 = vmatprep.mubr.msk.bf16.mxu1 %vm1102_vm1, %v1509_v60  ;;  %v1510_v4 = vunpack.c.l.bf16 %v1509_v60 }
 0x9ec   :  { %v1511_v5 = vsub.f32 %v1508_v59, %v1510_v4 }
 0x9ee   :  { %1513 = vrot.lane.b32.xlu0 %v1511_v5, %s2160_s14 }
 0xa60   :  { %v1514_v6 = vpop.permute.xlu0 %1513 }
 0xa61   :  { %v1516_v48 = vsel %vm1102_vm1, %v1508_v59, %v1514_v6 }
 0xa62   :  { %v1517_v35 = vpack.c.bf16 %v1516_v48, %v1516_v48 }
 0xa64   :  { %1554 = vmatmul.mubr.bf16.vlgmr.msra.gmra.mrb[16].mxu1 %v1517_v35 }
 0xa65   :  { %1688 = vmatpush1.bf16.msra.mxu1 %v2808_v15  ;;  %v2144_v15 = vld [vmem:[%s2998_s3 + $0x54] ss:$8 sps:$4 sm:$0xff]  }
 0xa66   :  { %1689 = vmatprep.subr.bf16.mxu1 %v2814_v37  ;;  %v2145_v37 = vld [vmem:[%s2998_s3 + $0x50] ss:$8 sps:$4 sm:$0xff]  }
 0xa69   :  { %1690 = vmatpush1.bf16.msra.mxu1 %v2820_v38  ;;  %v2146_v38 = vld [vmem:[%s2998_s3 + $0x64] ss:$8 sps:$4 sm:$0xff]  }
 0xa6a   :  { %1691 = vmatprep.subr.bf16.mxu1 %v2826_v40  ;;  %v2147_v40 = vld [vmem:[%s2998_s3 + $0x60] ss:$8 sps:$4 sm:$0xff]  }
 0xa6d   :  { %1692 = vmatpush1.bf16.msra.mxu1 %v2869_v50 }
 0xa6e   :  { %1693 = vmatprep.subr.bf16.mxu1 %v2875_v3 }
 0xa71   :  { %1694 = vmatpush1.bf16.msra.mxu1 %v2881_v20 }
 0xa72   :  { %1695 = vmatprep.subr.bf16.mxu1 %v2887_v26 }
 0xa75   :  { %1696 = vmatpush1.bf16.msra.mxu1 %v2893_v31 }
 0xa76   :  { %1697 = vmatprep.subr.bf16.mxu1 %v2144_v15 }
 0xa79   :  { %1698 = vmatpush1.bf16.msra.mxu1 %v2145_v37 }
 0xa7a   :  { %1699 = vmatprep.subr.bf16.mxu1 %v2146_v38 }
 0xa7d   :  { %1700 = vmatpush1.bf16.msra.mxu1 %v2147_v40 }
 0xa7e   :  { %1701 = vmatprep.subr.bf16.mxu1 %v2148_v17 }
 0xa81   :  { %1702 = vmatpush1.bf16.msra.mxu1 %v2149_v8 }
 0xa82   :  { %1703 = vmatprep.subr.bf16.mxu1 %v2150_v12 }
 0xa85   :  { %1704 = vmatpush1.bf16.msra.mxu1 %v2151_v55 }
 0xa86   :  { %1705 = vmatprep.subr.bf16.mxu1 %v2152_v14 }
 0xa89   :  { %1706 = vmatpush1.bf16.msra.mxu1 %v2153_v45 }
 0xa8a   :  { %1707 = vmatprep.subr.bf16.mxu1 %v2154_v13 }
 0xa8d   :  { %1708 = vmatpush1.bf16.msra.mxu1 %v2155_v54 }
 0xa8e   :  { %1709 = vmatprep.subr.bf16.mxu1 %v2156_v25 }
 0xa91   :  { %1710 = vmatpush1.bf16.msra.mxu1 %v2157_v2 }
 0xb37   :  { %v1555_v47 = vpop.f32.mrb[16].mxu1 }
 0xb38   :  { %v1562_v52 = vadd.f32 %v2717_v28, %v1555_v47  ;;  %v1557_v18 = vpop.f32.mrb[17].mxu1 }
 0xb39   :  { %v1563_v32 = vadd.f32 %v2719_v23, %v1557_v18  ;;  %v1559_v63 = vpop.f32.mrb[18].mxu1 }
 0xb3a   :  { %v1812_v62 = vmul.f32 -1.442695, %v1562_v52  ;;  %1570 = vrot.lane.b32.xlu1 %v1562_v52, %s2160_s14  ;;  %v1560_v19 = vpop.f32.mrb[19].mxu1 }
 0xb3b   :  { %1579 = vrot.lane.b32.xlu0 %v1563_v32, %s2160_s14 }
 0xb3c   :  { %2086 = vpow2.f32 %v1812_v62 }
 0xb3d   :  { %2088 = vtanh.f32 %v1563_v32 }
 0xb46   :  { %v2087_v50 = vpop.eup %2086 }
 0xb47   :  { %v1567_v3 = vadd.f32 1.0, %v2087_v50  ;;  %v2089_v20 = vpop.eup %2088 }
 0xb49   :  { %2090 = vrcp.f32 %v1567_v3 }
 0xb53   :  { %v2091_v26 = vpop.eup %2090 }
 0xb54   :  { %v1588_v31 = vmul.f32 %v2091_v26, %v2089_v20 }
 0xbac   :  { %v1571_v49 = vpop.permute.xlu1 %1570 }
 0xbad   :  { %v1813_v28 = vmul.f32 -1.442695, %v1571_v49  ;;  %v1580_v33 = vpop.permute.xlu0 %1579 }
 0xbae   :  { %v1814_v23 = vmul.f32 -1.442695, %v1580_v33 }
 0xbaf   :  { %2092 = vpow2.f32 %v1813_v28 }
 0xbb0   :  { %2094 = vpow2.f32 %v1814_v23 }
 0xbb9   :  { %v2093_v34 = vpop.eup %2092 }
 0xbba   :  { %v1575_v29 = vadd.f32 1.0, %v2093_v34  ;;  %v2095_v53 = vpop.eup %2094 }
 0xbbb   :  { %v1584_v7 = vadd.f32 1.0, %v2095_v53 }
 0xbbc   :  { %2096 = vrcp.f32 %v1575_v29 }
 0xbbd   :  { %2098 = vrcp.f32 %v1584_v7 }
 0xbc6   :  { %v2097_v1 = vpop.eup %2096 }
 0xbc7   :  { %v1587_v42 = vmul.f32 %v2097_v1, %v2915_v51  ;;  %v2099_v39 = vpop.eup %2098 }
 0xbc9   :  { %v1589_v43 = vadd.f32 %v1588_v31, %v1587_v42 }
 0xbcb   :  { %2100 = vtanh.f32 %v1589_v43 }
 0xbd5   :  { %v2101_v0 = vpop.eup %2100 }
 0xbd6   :  { %v1591_v9 = vmul.f32 %v2101_v0, %v2099_v39 }
 0xbd8   :  { %v1592_v44 = vpack.c.bf16 %v1591_v9, %v1591_v9 }
 0xbda   :  { %1815 = vmatprep.mubr.msk.bf16.mxu0 %vm1102_vm1, %v1592_v44  ;;  %v1593_v21 = vunpack.c.l.bf16 %v1592_v44 }
 0xbdc   :  { %v1594_v10 = vsub.f32 %v1591_v9, %v1593_v21 }
 0xbde   :  { %1596 = vrot.lane.b32.xlu1 %v1594_v10, %s2160_s14 }
 0xc50   :  { %v1597_v61 = vpop.permute.xlu1 %1596 }
 0xc51   :  { %v1599_v11 = vsel %vm1102_vm1, %v1591_v9, %v1597_v61 }
 0xc52   :  { %v1600_v24 = vpack.c.bf16 %v1599_v11, %v1599_v11 }
 0xc54   :  { %1637 = vmatmul.mubr.bf16.vlgmr.msra.gmra.mrb[20].mxu0 %v1600_v24 }
 0xd27   :  { %v1638_v57 = vpop.f32.mrb[20].mxu0 }
 0xd28   :  { %v1645_v27 = vadd.f32 %v2721_v16, %v1638_v57  ;;  %v1640_v30 = vpop.f32.mrb[21].mxu0 }
 0xd29   :  { %v1646_v46 = vadd.f32 %v2723_v22, %v1640_v30  ;;  %v1642_v51 = vpop.f32.mrb[22].mxu0 }
 0xd2a   :  { %v1816_v56 = vmul.f32 -1.442695, %v1645_v27  ;;  %1653 = vrot.lane.b32.xlu0 %v1645_v27, %s2160_s14  ;;  %v1643_v41 = vpop.f32.mrb[23].mxu0 }
 0xd2b   :  { %1662 = vrot.lane.b32.xlu1 %v1646_v46, %s2160_s14 }
 0xd2c   :  { %2102 = vpow2.f32 %v1816_v56 }
 0xd2d   :  { %2104 = vtanh.f32 %v1646_v46 }
 0xd36   :  { %v2103_v59 = vpop.eup %2102 }
 0xd37   :  { %v1650_v60 = vadd.f32 1.0, %v2103_v59  ;;  %v2105_v4 = vpop.eup %2104 }
 0xd39   :  { %2106 = vrcp.f32 %v1650_v60 }
 0xd43   :  { %v2107_v5 = vpop.eup %2106 }
 0xd44   :  { %v1671_v6 = vmul.f32 %v2107_v5, %v2105_v4 }
 0xd9c   :  { %v1654_v48 = vpop.permute.xlu0 %1653 }
 0xd9d   :  { %v1817_v16 = vmul.f32 -1.442695, %v1654_v48  ;;  %v1663_v35 = vpop.permute.xlu1 %1662 }
 0xd9e   :  { %v1818_v22 = vmul.f32 -1.442695, %v1663_v35 }
 0xd9f   :  { %2108 = vpow2.f32 %v1817_v16 }
 0xda0   :  { %2110 = vpow2.f32 %v1818_v22 }
 0xda9   :  { %v2109_v15 = vpop.eup %2108 }
 0xdaa   :  { %v1658_v37 = vadd.f32 1.0, %v2109_v15  ;;  %v2111_v38 = vpop.eup %2110 }
 0xdab   :  { %v1667_v17 = vadd.f32 1.0, %v2111_v38 }
 0xdac   :  { %2112 = vrcp.f32 %v1658_v37 }
 0xdad   :  { %2114 = vrcp.f32 %v1667_v17 }
 0xdb6   :  { %v2113_v40 = vpop.eup %2112 }
 0xdb7   :  { %v1670_v8 = vmul.f32 %v2113_v40, %v1589_v43  ;;  %v2115_v55 = vpop.eup %2114 }
 0xdb9   :  { %v1672_v12 = vadd.f32 %v1671_v6, %v1670_v8 }
 0xdbb   :  { %2116 = vtanh.f32 %v1672_v12 }
 0xdc5   :  { %v2117_v14 = vpop.eup %2116 }
 0xdc6   :  { %v1674_v45 = vmul.f32 %v2117_v14, %v2115_v55 }
 0xdc8   :  { %v1675_v13 = vpack.c.bf16 %v1674_v45, %v1674_v45 }
 0xdca   :  { %1819 = vmatprep.mubr.msk.bf16.mxu1 %vm1102_vm1, %v1675_v13  ;;  %v1676_v54 = vunpack.c.l.bf16 %v1675_v13 }
 0xdcc   :  { %v1677_v25 = vsub.f32 %v1674_v45, %v1676_v54 }
 0xdce   :  { %1679 = vrot.lane.b32.xlu0 %v1677_v25, %s2160_s14 }
 0xe40   :  { %v1680_v2 = vpop.permute.xlu0 %1679 }
 0xe41   :  { %v1682_v47 = vsel %vm1102_vm1, %v1674_v45, %v1680_v2 }
 0xe42   :  { %v1683_v52 = vpack.c.bf16 %v1682_v47, %v1682_v47 }
 0xe44   :  { %1720 = vmatmul.mubr.bf16.vlgmr.msra.gmra.mrb[20].mxu1 %v1683_v52 }
 0xf17   :  { %v1721_v18 = vpop.f32.mrb[20].mxu1 }
 0xf18   :  { %v1728_v32 = vadd.f32 %v2725_v36, %v1721_v18  ;;  %v1723_v63 = vpop.f32.mrb[21].mxu1 }
 0xf19   :  { %v1729_v62 = vadd.f32 %v2727_v58, %v1723_v63  ;;  %v1725_v19 = vpop.f32.mrb[22].mxu1 }
 0xf1a   :  { %v1820_v50 = vmul.f32 -1.442695, %v1728_v32  ;;  %1736 = vrot.lane.b32.xlu1 %v1728_v32, %s2160_s14  ;;  %v1726_v3 = vpop.f32.mrb[23].mxu1 }
 0xf1b   :  { %1745 = vrot.lane.b32.xlu0 %v1729_v62, %s2160_s14 }
 0xf1c   :  { %2118 = vpow2.f32 %v1820_v50 }
 0xf1d   :  { %2120 = vtanh.f32 %v1729_v62 }
 0xf26   :  { %v2119_v20 = vpop.eup %2118 }
 0xf27   :  { %v1733_v26 = vadd.f32 1.0, %v2119_v20  ;;  %v2121_v31 = vpop.eup %2120 }
 0xf29   :  { %2122 = vrcp.f32 %v1733_v26 }
 0xf33   :  { %v2123_v49 = vpop.eup %2122 }
 0xf34   :  { %v1754_v28 = vmul.f32 %v2123_v49, %v2121_v31 }
 0xf8c   :  { %v1737_v33 = vpop.permute.xlu1 %1736 }
 0xf8d   :  { %v1821_v36 = vmul.f32 -1.442695, %v1737_v33  ;;  %v1746_v1 = vpop.permute.xlu0 %1745 }
 0xf8e   :  { %v1822_v7 = vmul.f32 -1.442695, %v1746_v1 }
 0xf8f   :  { %2124 = vpow2.f32 %v1821_v36 }
 0xf99   :  { %v2125_v23 = vpop.eup %2124 }
 0xf9a   :  { %v1741_v58 = vadd.f32 1.0, %v2125_v23 }
 0xf9c   :  { %2126 = vrcp.f32 %v1741_v58 }
 0xf9d   :  { %2128 = vpow2.f32 %v1822_v7 }
 0xfa6   :  { %v2127_v34 = vpop.eup %2126 }
 0xfa7   :  { %v1753_v29 = vmul.f32 %v2127_v34, %v1672_v12  ;;  %v2129_v42 = vpop.eup %2128 }
 0xfa8   :  { %v1750_v43 = vadd.f32 1.0, %v2129_v42 }
 0xfa9   :  { %v1755_v53 = vadd.f32 %v1754_v28, %v1753_v29 }
 0xfab   :  { %1759 = vrot.lane.b32.xlu1 %v1755_v53, %s2160_s14  ;;  %2130 = vtanh.f32 %v1755_v53 }
 0xfac   :  { %2132 = vrcp.f32 %v1750_v43 }
 0xfb5   :  { %v2131_v39 = vpop.eup %2130 }
 0xfb6   :  { %v2133_v0 = vpop.eup %2132 }
 0xfb7   :  { %v1757_v9 = vmul.f32 %v2133_v0, %v2131_v39 }
0x101d   :  { %v1760_v44 = vpop.permute.xlu1 %1759 }
0x101e   :  { %v1762_v21 = vsel %vm1102_vm1, %v1757_v9, %v1760_v44 }
0x101f   :  { %1763 = vst [vmem:[%s3000_s4] sm:$0xff] %v1762_v21 }

</bundles_post_ra>
